<compile_context>
chip_gen: v6e
topology: v6e:2x2x1
jax: 0.10.0
libtpu: 0.0.40
codegen_flags: <defaults>
</compile_context>

<pallas_src>
import numpy as np
import jax
import jax.numpy as jnp
from jax.experimental import pallas as pl
from jax.experimental.pallas import tpu as pltpu

H = W = 16            # spatial size implied by fc1 (2 * 16 * 16 input features)
C1, C2 = 4, 2         # conv1 / conv2 output channels


# ----------------------------------------------------------------------------
# Host-side, one-time weight preparation
# ----------------------------------------------------------------------------
def _bicubic_matrix(in_size, out_size, a=-0.75):
    """Separable resize matrix matching torch bicubic (align_corners=False)."""
    def cubic(x):
        x = abs(x)
        if x <= 1.0:
            return (a + 2.0) * x ** 3 - (a + 3.0) * x ** 2 + 1.0
        if x < 2.0:
            return a * x ** 3 - 5.0 * a * x ** 2 + 8.0 * a * x - 4.0 * a
        return 0.0
    mat = np.zeros((out_size, in_size), np.float32)
    scale = in_size / out_size
    for o in range(out_size):
        s = (o + 0.5) * scale - 0.5
        f = int(np.floor(s))
        t = s - f
        for k in range(-1, 3):
            idx = min(max(f + k, 0), in_size - 1)
            mat[o, idx] += cubic(k - t)
    return mat


def _conv_to_matrix(w):
    """im2col matrix for a 3x3, stride-1, pad-1 conv on a 16x16 map.

    w: (OC, IC, 3, 3) numpy. Returns M of shape (IC*256, OC*256) such that
    out_flat = in_flat @ M (cross-correlation, matching nn.Conv2d), with flat
    index c*256 + h*16 + w on both sides.
    """
    oc_n, ic_n, _, _ = w.shape
    M = np.zeros((ic_n * 256, oc_n * 256), np.float32)
    oh, ow = np.meshgrid(np.arange(16), np.arange(16), indexing='ij')
    oh, ow = oh.ravel(), ow.ravel()
    for oc in range(oc_n):
        for ic in range(ic_n):
            for kh in range(3):
                for kw in range(3):
                    ih, iw = oh + kh - 1, ow + kw - 1
                    v = (ih >= 0) & (ih < 16) & (iw >= 0) & (iw < 16)
                    src = ic * 256 + ih[v] * 16 + iw[v]
                    dst = oc * 256 + oh[v] * 16 + ow[v]
                    M[src, dst] = w[oc, ic, kh, kw]
    return M


def prepare_params(p):
    """One-time host-side prep: im2col mats, transposes, bf16 casts, head fusion."""
    bf16 = jnp.bfloat16
    npf = lambda a: np.asarray(a, np.float32)

    m1 = _conv_to_matrix(npf(p['conv1_w']))                  # (256, 1024)
    m2 = _conv_to_matrix(npf(p['conv2_w']))                  # (1024, 512)
    b1 = np.repeat(npf(p['conv1_b']), 256)[None, :]          # (1, 1024)
    b2 = np.repeat(npf(p['conv2_b']), 256)[None, :]          # (1, 512)

    # Fused actor/critic head: cols 0..3 = fc4, col 4 = critic, rest zero pad.
    head_w = np.zeros((64, 8), np.float32)
    head_w[:, 0:4] = npf(p['fc4_w']).T
    head_w[:, 4:5] = npf(p['critic_w']).T
    head_b = np.zeros((1, 8), np.float32)
    head_b[0, 0:4] = npf(p['fc4_b'])
    head_b[0, 4] = npf(p['critic_b'])[0]

    return dict(
        m1=jnp.asarray(m1, bf16), b1=jnp.asarray(b1),
        m2=jnp.asarray(m2, bf16), b2=jnp.asarray(b2),
        fc1_w=jnp.asarray(npf(p['fc1_w']).T, bf16),
        fc1_b=jnp.asarray(npf(p['fc1_b'])[None, :]),
        fc2_w=jnp.asarray(npf(p['fc2_w']).T, bf16),
        fc2_b=jnp.asarray(npf(p['fc2_b'])[None, :]),
        fc3_w=jnp.asarray(npf(p['fc3_w']).T),
        fc3_b=jnp.asarray(npf(p['fc3_b'])[None, :]),
        head_w=jnp.asarray(head_w), head_b=jnp.asarray(head_b),
    )


# ----------------------------------------------------------------------------
# Pallas kernel
# ----------------------------------------------------------------------------
def tron_kernel(board_ref,                  # (TB, 256) f32
                m1_ref, b1_ref,             # (256, 1024) bf16, (1, 1024) f32
                m2_ref, b2_ref,             # (1024, 512) bf16, (1, 512)  f32
                fc1_w_ref, fc1_b_ref,       # (512, 512)  bf16, (1, 512)  f32
                fc2_w_ref, fc2_b_ref,       # (512, 128)  bf16, (1, 128)  f32
                fc3_w_ref, fc3_b_ref,       # (128, 64)   f32,  (1, 64)   f32
                head_w_ref, head_b_ref,     # (64, 8)     f32,  (1, 8)    f32
                probs_ref, critic_ref):     # (TB, 4), (TB, 1) f32
    f32, bf16 = jnp.float32, jnp.bfloat16

    x = board_ref[...]                                             # (TB, 256)

    # conv1 (3x3, pad=1) as one im2col matmul, + bias + ReLU.
    h = jnp.dot(x.astype(bf16), m1_ref[...], preferred_element_type=f32)
    h = jnp.maximum(h + b1_ref[...], 0.0)                          # (TB, 1024)

    # conv2 (3x3, pad=1) as one im2col matmul, + bias + ReLU. Output order is
    # c*256 + h*16 + w, exactly the torch .view(-1, 512) flatten order.
    h = jnp.dot(h.astype(bf16), m2_ref[...], preferred_element_type=f32)
    h = jnp.maximum(h + b2_ref[...], 0.0)                          # (TB, 512)
    # bicubic 16x16 -> 16x16 resize (align_corners=False) is the identity map.

    h = jnp.dot(h.astype(bf16), fc1_w_ref[...], preferred_element_type=f32)
    h = jnp.maximum(h + fc1_b_ref[...], 0.0)                       # (TB, 512)

    h = jnp.dot(h.astype(bf16), fc2_w_ref[...], preferred_element_type=f32)
    h = jnp.maximum(h + fc2_b_ref[...], 0.0)                       # (TB, 128)

    h = jnp.dot(h, fc3_w_ref[...], preferred_element_type=f32)
    h = jnp.maximum(h + fc3_b_ref[...], 0.0)                       # (TB, 64)

    # Fused actor/critic head.
    head = jnp.dot(h, head_w_ref[...], preferred_element_type=f32) + head_b_ref[...]

    critic_ref[...] = head[:, 4:5]

    logits = head[:, 0:4]
    m = jnp.max(logits, axis=-1, keepdims=True)
    e = jnp.exp(logits - m)
    probs_ref[...] = e / jnp.sum(e, axis=-1, keepdims=True)        # exact: sums to 1


# ----------------------------------------------------------------------------
# Wrapper
# ----------------------------------------------------------------------------
def tron_net_forward(board_nchw, w, *, batch_tile=256):
    B = board_nchw.shape[0]
    assert board_nchw.shape[1:] == (1, H, W)
    x = board_nchw.reshape(B, H * W)                 # C=1; row-major h*16 + w

    tb = batch_tile if (B % batch_tile == 0) else B  # B=2 -> single full block
    grid = (B // tb,)

    def full(arr):
        return pl.BlockSpec(arr.shape, lambda i: (0,) * arr.ndim)

    weights = (w['m1'], w['b1'], w['m2'], w['b2'],
               w['fc1_w'], w['fc1_b'], w['fc2_w'], w['fc2_b'],
               w['fc3_w'], w['fc3_b'], w['head_w'], w['head_b'])

    in_specs = [pl.BlockSpec((tb, H * W), lambda i: (i, 0))] + [full(a) for a in weights]
    out_specs = (pl.BlockSpec((tb, 4), lambda i: (i, 0)),
                 pl.BlockSpec((tb, 1), lambda i: (i, 0)))

    probs, critic = pl.pallas_call(
        tron_kernel,
        out_shape=(jax.ShapeDtypeStruct((B, 4), jnp.float32),
                   jax.ShapeDtypeStruct((B, 1), jnp.float32)),
        grid=grid,
        in_specs=in_specs,
        out_specs=out_specs,
        compiler_params=pltpu.CompilerParams(dimension_semantics=("parallel",)),
    )(x, *weights)
    return probs, critic


# ----------------------------------------------------------------------------
# Params + pure-JAX reference
# ----------------------------------------------------------------------------
def init_params(key):
    ks = jax.random.split(key, 14)

    def dense(k, out_f, in_f):
        s = 1.0 / np.sqrt(in_f)
        return jax.random.uniform(k, (out_f, in_f), jnp.float32, -s, s)

    def bias(k, n, fan_in):
        s = 1.0 / np.sqrt(fan_in)
        return jax.random.uniform(k, (n,), jnp.float32, -s, s)

    return {
        'conv1_w': jax.random.uniform(ks[0], (4, 1, 3, 3), jnp.float32, -1 / 3, 1 / 3),
        'conv1_b': bias(ks[1], 4, 9),
        'conv2_w': jax.random.uniform(ks[2], (2, 4, 3, 3), jnp.float32, -1 / 6, 1 / 6),
        'conv2_b': bias(ks[3], 2, 36),
        'fc1_w': dense(ks[4], 512, 512), 'fc1_b': bias(ks[5], 512, 512),
        'fc2_w': dense(ks[6], 128, 512), 'fc2_b': bias(ks[7], 128, 512),
        'fc3_w': dense(ks[8], 64, 128),  'fc3_b': bias(ks[9], 64, 128),
        'fc4_w': dense(ks[10], 4, 64),   'fc4_b': bias(ks[11], 4, 64),
        'critic_w': dense(ks[12], 1, 64), 'critic_b': bias(ks[13], 1, 64),
    }


def reference_forward(board_nchw, p):
    """Pure-JAX reference reproducing the PyTorch forward."""
    with jax.default_matmul_precision('highest'):
        def conv(x, w, b):
            y = jax.lax.conv_general_dilated(
                x, w, window_strides=(1, 1), padding=((1, 1), (1, 1)),
                dimension_numbers=('NCHW', 'OIHW', 'NCHW'),
                precision=jax.lax.Precision.HIGHEST)
            return y + b.reshape(1, -1, 1, 1)

        x = jax.nn.relu(conv(board_nchw, p['conv1_w'], p['conv1_b']))
        x = jax.nn.relu(conv(x, p['conv2_w'], p['conv2_b']))
        # F.interpolate(16x16 -> 16x16, bicubic, align_corners=False) is the
        # identity map (asserted in __main__), so it is skipped here too.
        f = x.reshape(x.shape[0], -1)                      # (B, 2*16*16), c-major
        h1 = jax.nn.relu(f @ p['fc1_w'].T + p['fc1_b'])
        h2 = jax.nn.relu(h1 @ p['fc2_w'].T + p['fc2_b'])
        h3 = jax.nn.relu(h2 @ p['fc3_w'].T + p['fc3_b'])
        critic = h3 @ p['critic_w'].T + p['critic_b']
        probs = jax.nn.softmax(h3 @ p['fc4_w'].T + p['fc4_b'], axis=-1)
    return probs, critic


if __name__ == "__main__":
    # The 16x16 -> 16x16 bicubic resize with align_corners=False is the identity.
    assert np.allclose(_bicubic_matrix(16, 16), np.eye(16, dtype=np.float32), atol=1e-6)

    key = jax.random.PRNGKey(0)
    pkey, xkey = jax.random.split(key)
    params = init_params(pkey)
    board = jax.random.normal(xkey, (2, 1, H, W), jnp.float32)

    prepared = prepare_params(params)          # one-time host-side prep
    fwd = jax.jit(tron_net_forward)
    probs, critic = jax.block_until_ready(fwd(board, prepared))

    probs_ref, critic_ref = reference_forward(board, params)
    assert probs.shape == (2, 4) and critic.shape == (2, 1)
    assert bool(jnp.all(jnp.isfinite(probs))) and bool(jnp.all(jnp.isfinite(critic)))
    assert bool(jnp.allclose(jnp.sum(probs, axis=-1), 1.0, atol=1e-4))
    assert bool(jnp.allclose(probs, probs_ref, atol=1e-2, rtol=1e-2))
    assert bool(jnp.allclose(critic, critic_ref, atol=1e-2, rtol=1e-2))
    print("KERNEL_OK")
</pallas_src>

<mosaic_0001>
module attributes {stable_mosaic.version = 11 : i64} {
  func.func @tron_kernel(%arg0: i32, %arg1: memref<2x256xf32, #tpu.memory_space<vmem>>, %arg2: memref<256x1024xbf16, #tpu.memory_space<vmem>>, %arg3: memref<1x1024xf32, #tpu.memory_space<vmem>>, %arg4: memref<1024x512xbf16, #tpu.memory_space<vmem>>, %arg5: memref<1x512xf32, #tpu.memory_space<vmem>>, %arg6: memref<512x512xbf16, #tpu.memory_space<vmem>>, %arg7: memref<1x512xf32, #tpu.memory_space<vmem>>, %arg8: memref<512x128xbf16, #tpu.memory_space<vmem>>, %arg9: memref<1x128xf32, #tpu.memory_space<vmem>>, %arg10: memref<128x64xf32, #tpu.memory_space<vmem>>, %arg11: memref<1x64xf32, #tpu.memory_space<vmem>>, %arg12: memref<64x8xf32, #tpu.memory_space<vmem>>, %arg13: memref<1x8xf32, #tpu.memory_space<vmem>>, %arg14: memref<2x4xf32, #tpu.memory_space<vmem>>, %arg15: memref<2x1xf32, #tpu.memory_space<vmem>>) attributes {dimension_semantics = [#tpu.dimension_semantics<parallel>], iteration_bounds = array<i64: 1>, scalar_prefetch = 0 : i64, scratch_operands = 0 : i64, tpu.core_type = #tpu.core_type<tc>, window_params = [{transform_indices = @transform_0, window_bounds = array<i64: 2, 256>}, {pipeline_mode = #tpu.pipeline_mode<synchronous>, transform_indices = @transform_1, window_bounds = array<i64: 256, 1024>}, {pipeline_mode = #tpu.pipeline_mode<synchronous>, transform_indices = @transform_2, window_bounds = array<i64: 1, 1024>}, {pipeline_mode = #tpu.pipeline_mode<synchronous>, transform_indices = @transform_3, window_bounds = array<i64: 1024, 512>}, {pipeline_mode = #tpu.pipeline_mode<synchronous>, transform_indices = @transform_4, window_bounds = array<i64: 1, 512>}, {pipeline_mode = #tpu.pipeline_mode<synchronous>, transform_indices = @transform_5, window_bounds = array<i64: 512, 512>}, {pipeline_mode = #tpu.pipeline_mode<synchronous>, transform_indices = @transform_6, window_bounds = array<i64: 1, 512>}, {pipeline_mode = #tpu.pipeline_mode<synchronous>, transform_indices = @transform_7, window_bounds = array<i64: 512, 128>}, {pipeline_mode = #tpu.pipeline_mode<synchronous>, transform_indices = @transform_8, window_bounds = array<i64: 1, 128>}, {pipeline_mode = #tpu.pipeline_mode<synchronous>, transform_indices = @transform_9, window_bounds = array<i64: 128, 64>}, {pipeline_mode = #tpu.pipeline_mode<synchronous>, transform_indices = @transform_10, window_bounds = array<i64: 1, 64>}, {pipeline_mode = #tpu.pipeline_mode<synchronous>, transform_indices = @transform_11, window_bounds = array<i64: 64, 8>}, {pipeline_mode = #tpu.pipeline_mode<synchronous>, transform_indices = @transform_12, window_bounds = array<i64: 1, 8>}, {transform_indices = @transform_13, window_bounds = array<i64: 2, 4>}, {transform_indices = @transform_14, window_bounds = array<i64: 2, 1>}]} {
    %c0 = arith.constant 0 : index
    %c0_0 = arith.constant 0 : index
    %0 = vector.load %arg1[%c0, %c0_0] : memref<2x256xf32, #tpu.memory_space<vmem>>, vector<2x256xf32>
    %1 = arith.truncf %0 : vector<2x256xf32> to vector<2x256xbf16>
    %c0_1 = arith.constant 0 : index
    %c0_2 = arith.constant 0 : index
    %2 = vector.load %arg2[%c0_1, %c0_2] : memref<256x1024xbf16, #tpu.memory_space<vmem>>, vector<256x1024xbf16>
    %cst = arith.constant dense<0.000000e+00> : vector<2x1024xf32>
    %3 = tpu.matmul %1, %2, %cst {dimension_numbers = #tpu.dot_dimension_numbers<[1], [0], [0], [1], [0, 0, 1, 1], [], []>} : vector<2x256xbf16>, vector<256x1024xbf16>, vector<2x1024xf32> -> vector<2x1024xf32>
    %c0_3 = arith.constant 0 : index
    %c0_4 = arith.constant 0 : index
    %4 = vector.load %arg3[%c0_3, %c0_4] : memref<1x1024xf32, #tpu.memory_space<vmem>>, vector<1x1024xf32>
    %5 = vector.broadcast %4 : vector<1x1024xf32> to vector<2x1024xf32>
    %6 = arith.addf %3, %5 : vector<2x1024xf32>
    %cst_5 = arith.constant 0.000000e+00 : f32
    %7 = vector.broadcast %cst_5 : f32 to vector<2x1024xf32>
    %8 = arith.maximumf %6, %7 : vector<2x1024xf32>
    %9 = arith.truncf %8 : vector<2x1024xf32> to vector<2x1024xbf16>
    %c0_6 = arith.constant 0 : index
    %c0_7 = arith.constant 0 : index
    %10 = vector.load %arg4[%c0_6, %c0_7] : memref<1024x512xbf16, #tpu.memory_space<vmem>>, vector<1024x512xbf16>
    %cst_8 = arith.constant dense<0.000000e+00> : vector<2x512xf32>
    %11 = tpu.matmul %9, %10, %cst_8 {dimension_numbers = #tpu.dot_dimension_numbers<[1], [0], [0], [1], [0, 0, 1, 1], [], []>} : vector<2x1024xbf16>, vector<1024x512xbf16>, vector<2x512xf32> -> vector<2x512xf32>
    %c0_9 = arith.constant 0 : index
    %c0_10 = arith.constant 0 : index
    %12 = vector.load %arg5[%c0_9, %c0_10] : memref<1x512xf32, #tpu.memory_space<vmem>>, vector<1x512xf32>
    %13 = vector.broadcast %12 : vector<1x512xf32> to vector<2x512xf32>
    %14 = arith.addf %11, %13 : vector<2x512xf32>
    %cst_11 = arith.constant 0.000000e+00 : f32
    %15 = vector.broadcast %cst_11 : f32 to vector<2x512xf32>
    %16 = arith.maximumf %14, %15 : vector<2x512xf32>
    %17 = arith.truncf %16 : vector<2x512xf32> to vector<2x512xbf16>
    %c0_12 = arith.constant 0 : index
    %c0_13 = arith.constant 0 : index
    %18 = vector.load %arg6[%c0_12, %c0_13] : memref<512x512xbf16, #tpu.memory_space<vmem>>, vector<512x512xbf16>
    %cst_14 = arith.constant dense<0.000000e+00> : vector<2x512xf32>
    %19 = tpu.matmul %17, %18, %cst_14 {dimension_numbers = #tpu.dot_dimension_numbers<[1], [0], [0], [1], [0, 0, 1, 1], [], []>} : vector<2x512xbf16>, vector<512x512xbf16>, vector<2x512xf32> -> vector<2x512xf32>
    %c0_15 = arith.constant 0 : index
    %c0_16 = arith.constant 0 : index
    %20 = vector.load %arg7[%c0_15, %c0_16] : memref<1x512xf32, #tpu.memory_space<vmem>>, vector<1x512xf32>
    %21 = vector.broadcast %20 : vector<1x512xf32> to vector<2x512xf32>
    %22 = arith.addf %19, %21 : vector<2x512xf32>
    %cst_17 = arith.constant 0.000000e+00 : f32
    %23 = vector.broadcast %cst_17 : f32 to vector<2x512xf32>
    %24 = arith.maximumf %22, %23 : vector<2x512xf32>
    %25 = arith.truncf %24 : vector<2x512xf32> to vector<2x512xbf16>
    %c0_18 = arith.constant 0 : index
    %c0_19 = arith.constant 0 : index
    %26 = vector.load %arg8[%c0_18, %c0_19] : memref<512x128xbf16, #tpu.memory_space<vmem>>, vector<512x128xbf16>
    %cst_20 = arith.constant dense<0.000000e+00> : vector<2x128xf32>
    %27 = tpu.matmul %25, %26, %cst_20 {dimension_numbers = #tpu.dot_dimension_numbers<[1], [0], [0], [1], [0, 0, 1, 1], [], []>} : vector<2x512xbf16>, vector<512x128xbf16>, vector<2x128xf32> -> vector<2x128xf32>
    %c0_21 = arith.constant 0 : index
    %c0_22 = arith.constant 0 : index
    %28 = vector.load %arg9[%c0_21, %c0_22] : memref<1x128xf32, #tpu.memory_space<vmem>>, vector<1x128xf32>
    %29 = vector.broadcast %28 : vector<1x128xf32> to vector<2x128xf32>
    %30 = arith.addf %27, %29 : vector<2x128xf32>
    %cst_23 = arith.constant 0.000000e+00 : f32
    %31 = vector.broadcast %cst_23 : f32 to vector<2x128xf32>
    %32 = arith.maximumf %30, %31 : vector<2x128xf32>
    %c0_24 = arith.constant 0 : index
    %c0_25 = arith.constant 0 : index
    %33 = vector.load %arg10[%c0_24, %c0_25] : memref<128x64xf32, #tpu.memory_space<vmem>>, vector<128x64xf32>
    %cst_26 = arith.constant dense<0.000000e+00> : vector<2x64xf32>
    %34 = tpu.matmul %32, %33, %cst_26 {dimension_numbers = #tpu.dot_dimension_numbers<[1], [0], [0], [1], [0, 0, 1, 1], [], []>} : vector<2x128xf32>, vector<128x64xf32>, vector<2x64xf32> -> vector<2x64xf32>
    %c0_27 = arith.constant 0 : index
    %c0_28 = arith.constant 0 : index
    %35 = vector.load %arg11[%c0_27, %c0_28] : memref<1x64xf32, #tpu.memory_space<vmem>>, vector<1x64xf32>
    %36 = vector.broadcast %35 : vector<1x64xf32> to vector<2x64xf32>
    %37 = arith.addf %34, %36 : vector<2x64xf32>
    %cst_29 = arith.constant 0.000000e+00 : f32
    %38 = vector.broadcast %cst_29 : f32 to vector<2x64xf32>
    %39 = arith.maximumf %37, %38 : vector<2x64xf32>
    %c0_30 = arith.constant 0 : index
    %c0_31 = arith.constant 0 : index
    %40 = vector.load %arg12[%c0_30, %c0_31] : memref<64x8xf32, #tpu.memory_space<vmem>>, vector<64x8xf32>
    %cst_32 = arith.constant dense<0.000000e+00> : vector<2x8xf32>
    %41 = tpu.matmul %39, %40, %cst_32 {dimension_numbers = #tpu.dot_dimension_numbers<[1], [0], [0], [1], [0, 0, 1, 1], [], []>} : vector<2x64xf32>, vector<64x8xf32>, vector<2x8xf32> -> vector<2x8xf32>
    %c0_33 = arith.constant 0 : index
    %c0_34 = arith.constant 0 : index
    %42 = vector.load %arg13[%c0_33, %c0_34] : memref<1x8xf32, #tpu.memory_space<vmem>>, vector<1x8xf32>
    %43 = vector.broadcast %42 : vector<1x8xf32> to vector<2x8xf32>
    %44 = arith.addf %41, %43 : vector<2x8xf32>
    %45 = vector.extract_strided_slice %44 {offsets = [0, 4], sizes = [2, 1], strides = [1, 1]} : vector<2x8xf32> to vector<2x1xf32>
    %c0_35 = arith.constant 0 : index
    %c0_36 = arith.constant 0 : index
    %46 = vector.load %arg15[%c0_35, %c0_36] : memref<2x1xf32, #tpu.memory_space<vmem>>, vector<2x1xf32>
    tpu.vector_store %arg15[%c0_35, %c0_36], %45 {strides = array<i32>} : memref<2x1xf32, #tpu.memory_space<vmem>>, vector<2x1xf32>,
    %47 = vector.extract_strided_slice %44 {offsets = [0, 0], sizes = [2, 4], strides = [1, 1]} : vector<2x8xf32> to vector<2x4xf32>
    %cst_37 = arith.constant dense<0xFF800000> : vector<2xf32>
    %48 = vector.multi_reduction <maximumf>, %47, %cst_37 [1] : vector<2x4xf32> to vector<2xf32>
    %49 = vector.shape_cast %48 : vector<2xf32> to vector<2x1xf32>
    %50 = vector.broadcast %49 : vector<2x1xf32> to vector<2x4xf32>
    %51 = arith.subf %47, %50 : vector<2x4xf32>
    %52 = math.exp %51 : vector<2x4xf32>
    %cst_38 = arith.constant dense<0.000000e+00> : vector<2xf32>
    %53 = vector.multi_reduction <add>, %52, %cst_38 [1] : vector<2x4xf32> to vector<2xf32>
    %54 = vector.shape_cast %53 : vector<2xf32> to vector<2x1xf32>
    %55 = vector.broadcast %54 : vector<2x1xf32> to vector<2x4xf32>
    %56 = arith.divf %52, %55 : vector<2x4xf32>
    %c0_39 = arith.constant 0 : index
    %c0_40 = arith.constant 0 : index
    %57 = vector.load %arg14[%c0_39, %c0_40] : memref<2x4xf32, #tpu.memory_space<vmem>>, vector<2x4xf32>
    tpu.vector_store %arg14[%c0_39, %c0_40], %56 {strides = array<i32>} : memref<2x4xf32, #tpu.memory_space<vmem>>, vector<2x4xf32>,
    return
  }
  func.func @transform_0(%arg0: i32) -> (i32, i32) {
    %c0_i32 = arith.constant 0 : i32
    %c0_i32_0 = arith.constant 0 : i32
    return %arg0, %c0_i32 : i32, i32
  }
  func.func @transform_1(%arg0: i32) -> (i32, i32) {
    %c0_i32 = arith.constant 0 : i32
    %c0_i32_0 = arith.constant 0 : i32
    %c0_i32_1 = arith.constant 0 : i32
    return %c0_i32, %c0_i32_0 : i32, i32
  }
  func.func @transform_2(%arg0: i32) -> (i32, i32) {
    %c0_i32 = arith.constant 0 : i32
    %c0_i32_0 = arith.constant 0 : i32
    %c0_i32_1 = arith.constant 0 : i32
    return %c0_i32, %c0_i32_0 : i32, i32
  }
  func.func @transform_3(%arg0: i32) -> (i32, i32) {
    %c0_i32 = arith.constant 0 : i32
    %c0_i32_0 = arith.constant 0 : i32
    %c0_i32_1 = arith.constant 0 : i32
    return %c0_i32, %c0_i32_0 : i32, i32
  }
  func.func @transform_4(%arg0: i32) -> (i32, i32) {
    %c0_i32 = arith.constant 0 : i32
    %c0_i32_0 = arith.constant 0 : i32
    %c0_i32_1 = arith.constant 0 : i32
    return %c0_i32, %c0_i32_0 : i32, i32
  }
  func.func @transform_5(%arg0: i32) -> (i32, i32) {
    %c0_i32 = arith.constant 0 : i32
    %c0_i32_0 = arith.constant 0 : i32
    %c0_i32_1 = arith.constant 0 : i32
    return %c0_i32, %c0_i32_0 : i32, i32
  }
  func.func @transform_6(%arg0: i32) -> (i32, i32) {
    %c0_i32 = arith.constant 0 : i32
    %c0_i32_0 = arith.constant 0 : i32
    %c0_i32_1 = arith.constant 0 : i32
    return %c0_i32, %c0_i32_0 : i32, i32
  }
  func.func @transform_7(%arg0: i32) -> (i32, i32) {
    %c0_i32 = arith.constant 0 : i32
    %c0_i32_0 = arith.constant 0 : i32
    %c0_i32_1 = arith.constant 0 : i32
    return %c0_i32, %c0_i32_0 : i32, i32
  }
  func.func @transform_8(%arg0: i32) -> (i32, i32) {
    %c0_i32 = arith.constant 0 : i32
    %c0_i32_0 = arith.constant 0 : i32
    %c0_i32_1 = arith.constant 0 : i32
    return %c0_i32, %c0_i32_0 : i32, i32
  }
  func.func @transform_9(%arg0: i32) -> (i32, i32) {
    %c0_i32 = arith.constant 0 : i32
    %c0_i32_0 = arith.constant 0 : i32
    %c0_i32_1 = arith.constant 0 : i32
    return %c0_i32, %c0_i32_0 : i32, i32
  }
  func.func @transform_10(%arg0: i32) -> (i32, i32) {
    %c0_i32 = arith.constant 0 : i32
    %c0_i32_0 = arith.constant 0 : i32
    %c0_i32_1 = arith.constant 0 : i32
    return %c0_i32, %c0_i32_0 : i32, i32
  }
  func.func @transform_11(%arg0: i32) -> (i32, i32) {
    %c0_i32 = arith.constant 0 : i32
    %c0_i32_0 = arith.constant 0 : i32
    %c0_i32_1 = arith.constant 0 : i32
    return %c0_i32, %c0_i32_0 : i32, i32
  }
  func.func @transform_12(%arg0: i32) -> (i32, i32) {
    %c0_i32 = arith.constant 0 : i32
    %c0_i32_0 = arith.constant 0 : i32
    %c0_i32_1 = arith.constant 0 : i32
    return %c0_i32, %c0_i32_0 : i32, i32
  }
  func.func @transform_13(%arg0: i32) -> (i32, i32) {
    %c0_i32 = arith.constant 0 : i32
    %c0_i32_0 = arith.constant 0 : i32
    return %arg0, %c0_i32 : i32, i32
  }
  func.func @transform_14(%arg0: i32) -> (i32, i32) {
    %c0_i32 = arith.constant 0 : i32
    %c0_i32_0 = arith.constant 0 : i32
    return %arg0, %c0_i32 : i32, i32
  }
}

</mosaic_0001>

<bundles_post_ra>
// kernel: tron_net_forward.1
= control target key start
LH: loop header
LB: loop body
LE: loop exit
PB: predicated region body
PF: predicated region fallthrough
CT: control target
= control target key end

     0   :  { %20 = vsyncpa [#allocation3], 0  ;;  %s6332_s0 = inlined_call_operand.vmem [shape: f32[2,256], index: 0, kind: input, shape index: {}]   ;;  %s6333_s1 = inlined_call_operand.hbm [shape: bf16[256,1024], index: 1, kind: input, shape index: {}]   ;;  %s6334_s2 = inlined_call_operand.vmem [shape: f32[1,1024], index: 2, kind: input, shape index: {}]   ;;  %s6335_s3 = inlined_call_operand.hbm [shape: bf16[1024,512], index: 3, kind: input, shape index: {}]   ;;  %s6336_s4 = inlined_call_operand.vmem [shape: f32[1,512], index: 4, kind: input, shape index: {}]   ;;  %s6337_s5 = inlined_call_operand.hbm [shape: bf16[512,512], index: 5, kind: input, shape index: {}]   ;;  %s6338_s6 = inlined_call_operand.vmem [shape: f32[1,512], index: 6, kind: input, shape index: {}]   ;;  %s6339_s7 = inlined_call_operand.vmem [shape: bf16[512,128], index: 7, kind: input, shape index: {}]   ;;  %s6340_s8 = inlined_call_operand.vmem [shape: f32[1,128], index: 8, kind: input, shape index: {}]   ;;  %s6341_s9 = inlined_call_operand.vmem [shape: f32[128,64], index: 9, kind: input, shape index: {}]   ;;  %s6342_s10 = inlined_call_operand.vmem [shape: f32[1,64], index: 10, kind: input, shape index: {}]   ;;  %s6343_s11 = inlined_call_operand.vmem [shape: f32[64,8], index: 11, kind: input, shape index: {}]   ;;  %s6344_s12 = inlined_call_operand.vmem [shape: f32[1,8], index: 12, kind: input, shape index: {}]   ;;  %s6345_s13 = inlined_call_operand.hbm [shape: f32[2,4], index: 13, kind: output, shape index: {0}]   ;;  %s6346_s14 = inlined_call_operand.vmem [shape: f32[2,1], index: 14, kind: output, shape index: {1}]  }
   0x1   :  { %21 = vsyncpa [#allocation6], 0 }
   0x2   :  { %22 = vsyncpa [#allocation4], 0  ;;  %s5897_s29 = smov [#allocation5]  }
   0x3   :  { %s44_s30 = sshll.u32 %s5897_s29, 4  ;;  %s45_s30 = int_to_ptr.vmem [resolvable:$true] %s44_s30 }
   0x4   :  { %s5819_s15 = scalar_lea.vmem %s45_s30, 32768  ;;  %p5824_p1 = scmp.lt.s32.totalorder %s45_s30, %s45_s30 }
   0x5   :  { %p5820_p0 = scmp.ne.s32.totalorder %s45_s30, %s5819_s15  ;;  %p5825_p2 = scmp.lt.s32.totalorder %s5819_s15, %s5819_s15 }
   0x7   :  { %p5826_p3 = por %p5825_p2, %p5824_p1 }
   0x9   :  { %p5827_p4 = pnand %p5826_p3, %p5820_p0 }
   0xb   :  { %5830 = shalt.err (!%p5827_p4)
}
   0xc   :  { %s5898_s16 = smov 256   ;;  %s5899_s17 = smov 16  }
   0xd   :  { %50 = dma.hbm_to_vmem [thread:$0]  %s6335_s3, 32768, %s45_s30, [#allocation6], %s5898_s16, %s5898_s16, %s5899_s17  }
   0xe   :  { %s5900_s20 = smov [#allocation2]  }
   0xf   :  { %s30_s21 = sshll.u32 %s5900_s20, 4  ;;  %s31_s21 = int_to_ptr.vmem [resolvable:$true] %s30_s21 }
  0x10   :  { %s5839_s22 = scalar_lea.vmem %s31_s21, 16384  ;;  %p5844_p6 = scmp.lt.s32.totalorder %s31_s21, %s31_s21 }
  0x11   :  { %p5840_p5 = scmp.ne.s32.totalorder %s31_s21, %s5839_s22  ;;  %p5845_p7 = scmp.lt.s32.totalorder %s5839_s22, %s5839_s22 }
  0x13   :  { %p5846_p8 = por %p5845_p7, %p5844_p6 }
  0x15   :  { %p5847_p9 = pnand %p5846_p8, %p5840_p5 }
  0x17   :  { %5850 = shalt.err (!%p5847_p9)
}
  0x18   :  { %s5901_s23 = smov 512   ;;  %s5902_s24 = smov 32  }
  0x19   :  { %36 = dma.hbm_to_vmem [thread:$0]  %s6333_s1, 16384, %s31_s21, [#allocation3], %s5901_s23, %s5901_s23, %s5902_s24  }
  0x1a   :  { %s5903_s27 = smov [#allocation7]  }
  0x1b   :  { %s58_s28 = sshll.u32 %s5903_s27, 4  ;;  %s59_s28 = int_to_ptr.vmem [resolvable:$true] %s58_s28 }
  0x1c   :  { %s5859_s3 = scalar_lea.vmem %s59_s28, 16384  ;;  %p5864_p11 = scmp.lt.s32.totalorder %s59_s28, %s59_s28 }
  0x1d   :  { %p5860_p10 = scmp.ne.s32.totalorder %s59_s28, %s5859_s3  ;;  %p5865_p12 = scmp.lt.s32.totalorder %s5859_s3, %s5859_s3 }
  0x1f   :  { %p5866_p13 = por %p5865_p12, %p5864_p11 }
  0x21   :  { %p5867_p0 = pnand %p5866_p13, %p5860_p10 }
  0x23   :  { %5870 = shalt.err (!%p5867_p0)
}
  0x24   :  { %64 = dma.hbm_to_vmem [thread:$0]  %s6337_s5, 16384, %s59_s28, [#allocation6], %s5898_s16, %s5898_s16, %s5899_s17  }
  0x25   :  { %5891 = dma.done.wait [#allocation3], 16384  }
  0x26   :  { %5892 = vsyncadd [#allocation3], 4294950912 }
  0x27   :  { %5893 = dma.done.wait [#allocation6], 49152  }
  0x28   :  { %5894 = vsyncadd [#allocation6], 4294918144  ;;  %v159_v0 = vld [vmem:[#allocation2 + $0x1c0] sm:$0xff]  ;;  %v160_v2 = vld [vmem:[#allocation2 + $0x1c8] sm:$0xff]  ;;  %vm5905_vm0 = vmmov 0   ;;  %vm4402_vm1 = vcmask 523264  }
  0x29   :  { %v163_v1 = vld [vmem:[#allocation2 + $0x1e0] sm:$0xff]  ;;  %v164_v4 = vld [vmem:[#allocation2 + $0x1e8] sm:$0xff]  ;;  %vm4482_vm2 = vcmask 25600   ;;  %vm4480_vm3 = vcmask 1024  }
  0x2a   :  { %v4573_v3 = vcombine.high %v159_v0, %v163_v1  ;;  %v4572_v5 = vcombine.low %v159_v0, %v163_v1  ;;  %v151_v6 = vld [vmem:[#allocation2 + $0x180] sm:$0xff]  ;;  %v4575_v8 = vcombine.high %v160_v2, %v164_v4  ;;  %v4574_v9 = vcombine.low %v160_v2, %v164_v4  ;;  %v152_v11 = vld [vmem:[#allocation2 + $0x188] sm:$0xff] }
  0x2b   :  { %v155_v7 = vld [vmem:[#allocation2 + $0x1a0] sm:$0xff]  ;;  %v156_v12 = vld [vmem:[#allocation2 + $0x1a8] sm:$0xff] }
  0x2c   :  { %v4565_v10 = vcombine.high %v151_v6, %v155_v7  ;;  %v143_v13 = vld [vmem:[#allocation2 + $0x140] sm:$0xff]  ;;  %913 = vmatprep.subr.bf16.mxu0 %v4573_v3  ;;  %v4567_v14 = vcombine.high %v152_v11, %v156_v12  ;;  %v144_v16 = vld [vmem:[#allocation2 + $0x148] sm:$0xff]  ;;  %954 = vmatprep.subr.bf16.mxu1 %v4575_v8  ;;  %v4564_v18 = vcombine.low %v151_v6, %v155_v7 }
  0x2d   :  { %v147_v15 = vld [vmem:[#allocation2 + $0x160] sm:$0xff]  ;;  %v148_v17 = vld [vmem:[#allocation2 + $0x168] sm:$0xff]  ;;  %914 = vmatpush1.bf16.msra.mxu0 %v4572_v5  ;;  %955 = vmatpush1.bf16.msra.mxu1 %v4574_v9  ;;  %v4566_v19 = vcombine.low %v152_v11, %v156_v12 }
  0x2e   :  { %915 = vmatprep.subr.bf16.mxu0 %v4565_v10  ;;  %v4557_v20 = vcombine.high %v143_v13, %v147_v15  ;;  %956 = vmatprep.subr.bf16.mxu1 %v4567_v14  ;;  %v4559_v21 = vcombine.high %v144_v16, %v148_v17  ;;  %v135_v22 = vld [vmem:[#allocation2 + $0x100] sm:$0xff]  ;;  %v136_v24 = vld [vmem:[#allocation2 + $0x108] sm:$0xff]  ;;  %v4556_v26 = vcombine.low %v143_v13, %v147_v15 }
  0x2f   :  { %v139_v23 = vld [vmem:[#allocation2 + $0x120] sm:$0xff]  ;;  %v140_v25 = vld [vmem:[#allocation2 + $0x128] sm:$0xff]  ;;  %v4558_v27 = vcombine.low %v144_v16, %v148_v17 }
  0x30   :  { %v4549_v28 = vcombine.high %v135_v22, %v139_v23  ;;  %v4551_v29 = vcombine.high %v136_v24, %v140_v25  ;;  %v127_v30 = vld [vmem:[#allocation2 + $0xc0] sm:$0xff]  ;;  %v128_v32 = vld [vmem:[#allocation2 + $0xc8] sm:$0xff]  ;;  %v4548_v34 = vcombine.low %v135_v22, %v139_v23  ;;  %v4550_v35 = vcombine.low %v136_v24, %v140_v25 }
  0x31   :  { %916 = vmatpush1.bf16.msra.mxu0 %v4564_v18  ;;  %957 = vmatpush1.bf16.msra.mxu1 %v4566_v19  ;;  %v131_v31 = vld [vmem:[#allocation2 + $0xe0] sm:$0xff]  ;;  %v132_v33 = vld [vmem:[#allocation2 + $0xe8] sm:$0xff] }
  0x32   :  { %917 = vmatprep.subr.bf16.mxu0 %v4557_v20  ;;  %958 = vmatprep.subr.bf16.mxu1 %v4559_v21  ;;  %v4541_v36 = vcombine.high %v127_v30, %v131_v31  ;;  %v4543_v37 = vcombine.high %v128_v32, %v132_v33  ;;  %v119_v38 = vld [vmem:[#allocation2 + $0x80] sm:$0xff]  ;;  %v120_v40 = vld [vmem:[#allocation2 + $0x88] sm:$0xff]  ;;  %v4540_v42 = vcombine.low %v127_v30, %v131_v31 }
  0x33   :  { %v123_v39 = vld [vmem:[#allocation2 + $0xa0] sm:$0xff]  ;;  %v124_v41 = vld [vmem:[#allocation2 + $0xa8] sm:$0xff]  ;;  %v4542_v43 = vcombine.low %v128_v32, %v132_v33 }
  0x34   :  { %v4533_v44 = vcombine.high %v119_v38, %v123_v39  ;;  %v4535_v45 = vcombine.high %v120_v40, %v124_v41  ;;  %v111_v46 = vld [vmem:[#allocation2 + $0x40] sm:$0xff]  ;;  %v112_v48 = vld [vmem:[#allocation2 + $0x48] sm:$0xff]  ;;  %v4532_v50 = vcombine.low %v119_v38, %v123_v39  ;;  %v4534_v51 = vcombine.low %v120_v40, %v124_v41 }
  0x35   :  { %918 = vmatpush1.bf16.msra.mxu0 %v4556_v26  ;;  %959 = vmatpush1.bf16.msra.mxu1 %v4558_v27  ;;  %v115_v47 = vld [vmem:[#allocation2 + $0x60] sm:$0xff]  ;;  %v116_v49 = vld [vmem:[#allocation2 + $0x68] sm:$0xff] }
  0x36   :  { %919 = vmatprep.subr.bf16.mxu0 %v4549_v28  ;;  %960 = vmatprep.subr.bf16.mxu1 %v4551_v29  ;;  %v4525_v52 = vcombine.high %v111_v46, %v115_v47  ;;  %v5995_v53 = vld.sshfl [vmem:[%s6332_s0] sm:$0x33 pattern:$0x76325410]  ;;  %v4527_v54 = vcombine.high %v112_v48, %v116_v49  ;;  %v104_v58 = vld [vmem:[#allocation2 + $0x8] sm:$0xff]  ;;  %v4524_v60 = vcombine.low %v111_v46, %v115_v47 }
  0x37   :  { %v103_v55 = vld [vmem:[#allocation2] sm:$0xff]  ;;  %v98_v57 = vcombine.high %v5995_v53, %v5995_v53  ;;  %v108_v59 = vld [vmem:[#allocation2 + $0x28] sm:$0xff]  ;;  %v4526_v62 = vcombine.low %v112_v48, %v116_v49 }
  0x38   :  { %v107_v56 = vld [vmem:[#allocation2 + $0x20] sm:$0xff]  ;;  %v4519_v0 = vcombine.high %v104_v58, %v108_v59  ;;  %v224_v3 = vld [vmem:[#allocation2 + $0x3c8] sm:$0xff]  ;;  %v4518_v6 = vcombine.low %v104_v58, %v108_v59 }
  0x39   :  { %920 = vmatpush1.bf16.msra.mxu0 %v4548_v34  ;;  %961 = vmatpush1.bf16.msra.mxu1 %v4550_v35  ;;  %v5999_v61 = vpack.c.bf16 %v98_v57, %v98_v57  ;;  %v4517_v63 = vcombine.high %v103_v55, %v107_v56  ;;  %v223_v1 = vld [vmem:[#allocation2 + $0x3c0] sm:$0xff]  ;;  %v228_v4 = vld [vmem:[#allocation2 + $0x3e8] sm:$0xff]  ;;  %v4516_v5 = vcombine.low %v103_v55, %v107_v56 }
  0x3a   :  { %921 = vmatprep.subr.bf16.mxu0 %v4541_v36  ;;  %962 = vmatprep.subr.bf16.mxu1 %v4543_v37  ;;  %v227_v2 = vld [vmem:[#allocation2 + $0x3e0] sm:$0xff]  ;;  %v4639_v8 = vcombine.high %v224_v3, %v228_v4  ;;  %v216_v11 = vld [vmem:[#allocation2 + $0x388] sm:$0xff]  ;;  %v4638_v14 = vcombine.low %v224_v3, %v228_v4  ;;  %v165_v4 = vld [vmem:[#allocation2 + $0x1f0] sm:$0xff] }
  0x3b   :  { %945 = vmatprep.mubr.bf16.mxu0 %v5999_v61  ;;  %986 = vmatprep.mubr.bf16.mxu1 %v5999_v61  ;;  %v4637_v7 = vcombine.high %v223_v1, %v227_v2  ;;  %v215_v9 = vld [vmem:[#allocation2 + $0x380] sm:$0xff]  ;;  %v220_v12 = vld [vmem:[#allocation2 + $0x3a8] sm:$0xff]  ;;  %v4636_v13 = vcombine.low %v223_v1, %v227_v2  ;;  %v161_v2 = vld [vmem:[#allocation2 + $0x1d0] sm:$0xff] }
  0x3c   :  { %v219_v10 = vld [vmem:[#allocation2 + $0x3a0] sm:$0xff]  ;;  %v4631_v16 = vcombine.high %v216_v11, %v220_v12  ;;  %v208_v19 = vld [vmem:[#allocation2 + $0x348] sm:$0xff]  ;;  %v4630_v22 = vcombine.low %v216_v11, %v220_v12  ;;  %v157_v12 = vld [vmem:[#allocation2 + $0x1b0] sm:$0xff] }
  0x3d   :  { %922 = vmatpush1.bf16.msra.mxu0 %v4540_v42  ;;  %963 = vmatpush1.bf16.msra.mxu1 %v4542_v43  ;;  %v4629_v15 = vcombine.high %v215_v9, %v219_v10  ;;  %v207_v17 = vld [vmem:[#allocation2 + $0x340] sm:$0xff]  ;;  %v212_v20 = vld [vmem:[#allocation2 + $0x368] sm:$0xff]  ;;  %v4628_v21 = vcombine.low %v215_v9, %v219_v10  ;;  %v4577_v9 = vcombine.high %v161_v2, %v165_v4  ;;  %v153_v10 = vld [vmem:[#allocation2 + $0x190] sm:$0xff] }
  0x3e   :  { %923 = vmatprep.subr.bf16.mxu0 %v4533_v44  ;;  %964 = vmatprep.subr.bf16.mxu1 %v4535_v45  ;;  %v211_v18 = vld [vmem:[#allocation2 + $0x360] sm:$0xff]  ;;  %v4623_v24 = vcombine.high %v208_v19, %v212_v20  ;;  %v200_v27 = vld [vmem:[#allocation2 + $0x308] sm:$0xff]  ;;  %v4622_v30 = vcombine.low %v208_v19, %v212_v20  ;;  %v145_v19 = vld [vmem:[#allocation2 + $0x150] sm:$0xff] }
  0x3f   :  { %v4621_v23 = vcombine.high %v207_v17, %v211_v18  ;;  %v199_v25 = vld [vmem:[#allocation2 + $0x300] sm:$0xff]  ;;  %v204_v28 = vld [vmem:[#allocation2 + $0x328] sm:$0xff]  ;;  %v4620_v29 = vcombine.low %v207_v17, %v211_v18  ;;  %v4569_v18 = vcombine.high %v153_v10, %v157_v12 }
  0x40   :  { %v203_v26 = vld [vmem:[#allocation2 + $0x320] sm:$0xff]  ;;  %v4615_v32 = vcombine.high %v200_v27, %v204_v28  ;;  %v192_v35 = vld [vmem:[#allocation2 + $0x2c8] sm:$0xff]  ;;  %v4614_v38 = vcombine.low %v200_v27, %v204_v28  ;;  %v141_v28 = vld [vmem:[#allocation2 + $0x130] sm:$0xff] }
  0x41   :  { %924 = vmatpush1.bf16.msra.mxu0 %v4532_v50  ;;  %965 = vmatpush1.bf16.msra.mxu1 %v4534_v51  ;;  %v4613_v31 = vcombine.high %v199_v25, %v203_v26  ;;  %v191_v33 = vld [vmem:[#allocation2 + $0x2c0] sm:$0xff]  ;;  %v196_v36 = vld [vmem:[#allocation2 + $0x2e8] sm:$0xff]  ;;  %v4612_v37 = vcombine.low %v199_v25, %v203_v26  ;;  %v137_v26 = vld [vmem:[#allocation2 + $0x110] sm:$0xff] }
  0x42   :  { %925 = vmatprep.subr.bf16.mxu0 %v4525_v52  ;;  %966 = vmatprep.subr.bf16.mxu1 %v4527_v54  ;;  %v195_v34 = vld [vmem:[#allocation2 + $0x2e0] sm:$0xff]  ;;  %v4607_v41 = vcombine.high %v192_v35, %v196_v36  ;;  %v184_v43 = vld [vmem:[#allocation2 + $0x288] sm:$0xff]  ;;  %v4606_v46 = vcombine.low %v192_v35, %v196_v36  ;;  %v133_v36 = vld [vmem:[#allocation2 + $0xf0] sm:$0xff] }
  0x43   :  { %v4605_v39 = vcombine.high %v191_v33, %v195_v34  ;;  %v183_v40 = vld [vmem:[#allocation2 + $0x280] sm:$0xff]  ;;  %v188_v44 = vld [vmem:[#allocation2 + $0x2a8] sm:$0xff]  ;;  %v4604_v45 = vcombine.low %v191_v33, %v195_v34  ;;  %v4553_v33 = vcombine.high %v137_v26, %v141_v28  ;;  %v129_v34 = vld [vmem:[#allocation2 + $0xd0] sm:$0xff] }
  0x44   :  { %v187_v42 = vld [vmem:[#allocation2 + $0x2a0] sm:$0xff]  ;;  %v4599_v49 = vcombine.high %v184_v43, %v188_v44  ;;  %v176_v51 = vld [vmem:[#allocation2 + $0x248] sm:$0xff]  ;;  %v4598_v55 = vcombine.low %v184_v43, %v188_v44  ;;  %v125_v43 = vld [vmem:[#allocation2 + $0xb0] sm:$0xff] }
  0x45   :  { %926 = vmatpush1.bf16.msra.mxu0 %v4524_v60  ;;  %967 = vmatpush1.bf16.msra.mxu1 %v4526_v62  ;;  %v4597_v47 = vcombine.high %v183_v40, %v187_v42  ;;  %v175_v48 = vld [vmem:[#allocation2 + $0x240] sm:$0xff]  ;;  %v180_v52 = vld [vmem:[#allocation2 + $0x268] sm:$0xff]  ;;  %v4596_v54 = vcombine.low %v183_v40, %v187_v42  ;;  %v121_v42 = vld [vmem:[#allocation2 + $0x90] sm:$0xff] }
  0x46   :  { %927 = vmatprep.subr.bf16.mxu0 %v4517_v63  ;;  %968 = vmatprep.subr.bf16.mxu1 %v4519_v0  ;;  %v179_v50 = vld [vmem:[#allocation2 + $0x260] sm:$0xff]  ;;  %v4591_v58 = vcombine.high %v176_v51, %v180_v52  ;;  %v168_v60 = vld [vmem:[#allocation2 + $0x208] sm:$0xff]  ;;  %v4590_v0 = vcombine.low %v176_v51, %v180_v52  ;;  %v122_v44 = vld [vmem:[#allocation2 + $0x98] sm:$0xff] }
  0x47   :  { %v4589_v56 = vcombine.high %v175_v48, %v179_v50  ;;  %v167_v57 = vld [vmem:[#allocation2 + $0x200] sm:$0xff]  ;;  %v172_v62 = vld [vmem:[#allocation2 + $0x228] sm:$0xff]  ;;  %v4588_v63 = vcombine.low %v175_v48, %v179_v50  ;;  %v117_v48 = vld [vmem:[#allocation2 + $0x70] sm:$0xff]  ;;  %v4537_v50 = vcombine.high %v121_v42, %v125_v43 }
  0x48   :  { %v171_v59 = vld [vmem:[#allocation2 + $0x220] sm:$0xff]  ;;  %v4583_v3 = vcombine.high %v168_v60, %v172_v62  ;;  %v114_v51 = vld [vmem:[#allocation2 + $0x58] sm:$0xff] }
  0x49   :  { %928 = vmatpush1.bf16.msra.mxu0 %v4516_v5  ;;  %969 = vmatpush1.bf16.msra.mxu1 %v4518_v6  ;;  %v4581_v1 = vcombine.high %v167_v57, %v171_v59  ;;  %v162_v5 = vld [vmem:[#allocation2 + $0x1d8] sm:$0xff] }
  0x4a   :  { %929 = vmatprep.subr.bf16.mxu0 %v4637_v7  ;;  %970 = vmatprep.subr.bf16.mxu1 %v4639_v8  ;;  %v166_v6 = vld [vmem:[#allocation2 + $0x1f8] sm:$0xff]  ;;  %v4580_v7 = vcombine.low %v167_v57, %v171_v59  ;;  %v4582_v8 = vcombine.low %v168_v60, %v172_v62  ;;  %v109_v57 = vld [vmem:[#allocation2 + $0x30] sm:$0xff] }
  0x4b   :  { %v4579_v11 = vcombine.high %v162_v5, %v166_v6  ;;  %v4578_v17 = vcombine.low %v162_v5, %v166_v6  ;;  %v118_v52 = vld [vmem:[#allocation2 + $0x78] sm:$0xff] }
  0x4c   :  { %v106_v60 = vld [vmem:[#allocation2 + $0x18] sm:$0xff] }
  0x4d   :  { %930 = vmatpush2.bf16.msra.mxu0 %v4636_v13  ;;  %971 = vmatpush2.bf16.msra.mxu1 %v4638_v14  ;;  %v154_v13 = vld [vmem:[#allocation2 + $0x198] sm:$0xff]  ;;  %v6005_v14 = vpack.c.bf16 %v5995_v53, %v5995_v53  ;;  %v4568_v53 = vcombine.low %v153_v10, %v157_v12  ;;  %v221_v10 = vld [vmem:[#allocation2 + $0x3b0] sm:$0xff] }
  0x4e   :  { %931 = vmatprep.subr.bf16.mxu0 %v4629_v15  ;;  %972 = vmatprep.subr.bf16.mxu1 %v4631_v16  ;;  %v158_v15 = vld [vmem:[#allocation2 + $0x1b8] sm:$0xff]  ;;  %v4576_v16 = vcombine.low %v161_v2, %v165_v4  ;;  %v229_v2 = vld [vmem:[#allocation2 + $0x3f0] sm:$0xff] }
  0x4f   :  { %v4571_v20 = vcombine.high %v154_v13, %v158_v15  ;;  %v110_v62 = vld [vmem:[#allocation2 + $0x38] sm:$0xff] }
  0x50   :  { %v226_v5 = vld [vmem:[#allocation2 + $0x3d8] sm:$0xff] }
  0x51   :  { %932 = vmatpush2.bf16.msra.mxu0 %v4628_v21  ;;  %973 = vmatpush2.bf16.msra.mxu1 %v4630_v22  ;;  %v149_v21 = vld [vmem:[#allocation2 + $0x170] sm:$0xff]  ;;  %v146_v22 = vld [vmem:[#allocation2 + $0x158] sm:$0xff] }
  0x52   :  { %933 = vmatprep.subr.bf16.mxu0 %v4621_v23  ;;  %974 = vmatprep.subr.bf16.mxu1 %v4623_v24  ;;  %v150_v23 = vld [vmem:[#allocation2 + $0x178] sm:$0xff]  ;;  %v4570_v24 = vcombine.low %v154_v13, %v158_v15  ;;  %v4561_v25 = vcombine.high %v145_v19, %v149_v21 }
  0x53   :  { %v4563_v27 = vcombine.high %v146_v22, %v150_v23  ;;  %v230_v6 = vld [vmem:[#allocation2 + $0x3f8] sm:$0xff] }
  0x54   :  { %v218_v13 = vld [vmem:[#allocation2 + $0x398] sm:$0xff] }
  0x55   :  { %934 = vmatpush2.bf16.msra.mxu0 %v4620_v29  ;;  %975 = vmatpush2.bf16.msra.mxu1 %v4622_v30  ;;  %v138_v29 = vld [vmem:[#allocation2 + $0x118] sm:$0xff] }
  0x56   :  { %935 = vmatprep.subr.bf16.mxu0 %v4613_v31  ;;  %976 = vmatprep.subr.bf16.mxu1 %v4615_v32  ;;  %v142_v30 = vld [vmem:[#allocation2 + $0x138] sm:$0xff]  ;;  %v4560_v31 = vcombine.low %v145_v19, %v149_v21  ;;  %v4562_v32 = vcombine.low %v146_v22, %v150_v23  ;;  %v213_v19 = vld [vmem:[#allocation2 + $0x370] sm:$0xff] }
  0x57   :  { %v4555_v35 = vcombine.high %v138_v29, %v142_v30  ;;  %v4554_v40 = vcombine.low %v138_v29, %v142_v30  ;;  %v222_v15 = vld [vmem:[#allocation2 + $0x3b8] sm:$0xff] }
  0x58   :  { %v210_v22 = vld [vmem:[#allocation2 + $0x358] sm:$0xff] }
  0x59   :  { %936 = vmatpush2.bf16.msra.mxu0 %v4612_v37  ;;  %977 = vmatpush2.bf16.msra.mxu1 %v4614_v38  ;;  %v130_v37 = vld [vmem:[#allocation2 + $0xd8] sm:$0xff] }
  0x5a   :  { %937 = vmatprep.subr.bf16.mxu0 %v4605_v39  ;;  %978 = vmatprep.subr.bf16.mxu1 %v4607_v41  ;;  %v134_v38 = vld [vmem:[#allocation2 + $0xf8] sm:$0xff]  ;;  %v4552_v39 = vcombine.low %v137_v26, %v141_v28  ;;  %v4545_v41 = vcombine.high %v129_v34, %v133_v36  ;;  %v205_v26 = vld [vmem:[#allocation2 + $0x330] sm:$0xff] }
  0x5b   :  { %v214_v23 = vld [vmem:[#allocation2 + $0x378] sm:$0xff] }
  0x5c   :  { %v202_v29 = vld [vmem:[#allocation2 + $0x318] sm:$0xff] }
  0x5d   :  { %938 = vmatpush2.bf16.msra.mxu0 %v4604_v45  ;;  %979 = vmatpush2.bf16.msra.mxu1 %v4606_v46  ;;  %v126_v45 = vld [vmem:[#allocation2 + $0xb8] sm:$0xff]  ;;  %v4544_v46 = vcombine.low %v129_v34, %v133_v36  ;;  %v197_v34 = vld [vmem:[#allocation2 + $0x2f0] sm:$0xff] }
  0x5e   :  { %939 = vmatprep.subr.bf16.mxu0 %v4597_v47  ;;  %980 = vmatprep.subr.bf16.mxu1 %v4599_v49  ;;  %v113_v47 = vld [vmem:[#allocation2 + $0x50] sm:$0xff]  ;;  %v4546_v49 = vcombine.low %v130_v37, %v134_v38  ;;  %v206_v30 = vld [vmem:[#allocation2 + $0x338] sm:$0xff] }
  0x5f   :  { %v4529_v59 = vcombine.high %v113_v47, %v117_v48 }
  0x61   :  { %940 = vmatpush2.bf16.msra.mxu0 %v4596_v54  ;;  %981 = vmatpush2.bf16.msra.mxu1 %v4598_v55  ;;  %v4539_v54 = vcombine.high %v122_v44, %v126_v45  ;;  %v4536_v55 = vcombine.low %v121_v42, %v125_v43  ;;  %v189_v42 = vld [vmem:[#allocation2 + $0x2b0] sm:$0xff] }
  0x62   :  { %941 = vmatprep.subr.bf16.mxu0 %v4589_v56  ;;  %982 = vmatprep.subr.bf16.mxu1 %v4591_v58  ;;  %v105_v56 = vld [vmem:[#allocation2 + $0x10] sm:$0xff]  ;;  %v4538_v58 = vcombine.low %v122_v44, %v126_v45  ;;  %v186_v44 = vld [vmem:[#allocation2 + $0x298] sm:$0xff] }
  0x63   :  { %v4521_v4 = vcombine.high %v105_v56, %v109_v57  ;;  %v190_v45 = vld [vmem:[#allocation2 + $0x2b8] sm:$0xff] }
  0x65   :  { %942 = vmatpush2.bf16.msra.mxu0 %v4588_v63  ;;  %983 = vmatpush2.bf16.msra.mxu1 %v4590_v0  ;;  %v4531_v63 = vcombine.high %v114_v51, %v118_v52  ;;  %v4528_v0 = vcombine.low %v113_v47, %v117_v48  ;;  %v177_v48 = vld [vmem:[#allocation2 + $0x250] sm:$0xff] }
  0x66   :  { %943 = vmatprep.subr.bf16.mxu0 %v4581_v1  ;;  %984 = vmatprep.subr.bf16.mxu1 %v4583_v3  ;;  %v225_v1 = vld [vmem:[#allocation2 + $0x3d0] sm:$0xff]  ;;  %v4530_v3 = vcombine.low %v114_v51, %v118_v52  ;;  %v178_v52 = vld [vmem:[#allocation2 + $0x258] sm:$0xff] }
  0x67   :  { %v4641_v12 = vcombine.high %v225_v1, %v229_v2 }
  0x69   :  { %944 = vmatpush2.bf16.msra.mxu0 %v4580_v7  ;;  %985 = vmatpush2.bf16.msra.mxu1 %v4582_v8  ;;  %v4523_v7 = vcombine.high %v106_v60, %v110_v62  ;;  %v4520_v8 = vcombine.low %v105_v56, %v109_v57  ;;  %v169_v57 = vld [vmem:[#allocation2 + $0x210] sm:$0xff] }
  0x6a   :  { %995 = vmatprep.subr.bf16.mxu0 %v4577_v9  ;;  %1036 = vmatprep.subr.bf16.mxu1 %v4579_v11  ;;  %v217_v9 = vld [vmem:[#allocation2 + $0x390] sm:$0xff]  ;;  %v4522_v11 = vcombine.low %v106_v60, %v110_v62  ;;  %v170_v62 = vld [vmem:[#allocation2 + $0x218] sm:$0xff] }
  0x6b   :  { %v4633_v21 = vcombine.high %v217_v9, %v221_v10 }
  0x6c   :  { %946 = vmatmul.mubr.bf16.vlgmr.msra.gmra.mxu0 %v6005_v14  ;;  %987 = vmatmul.mubr.bf16.vlgmr.msra.gmra.mxu1 %v6005_v14 }
  0x6d   :  { %996 = vmatpush1.bf16.msra.mxu0 %v4576_v16  ;;  %1037 = vmatpush1.bf16.msra.mxu1 %v4578_v17  ;;  %v4643_v16 = vcombine.high %v226_v5, %v230_v6  ;;  %v4640_v17 = vcombine.low %v225_v1, %v229_v2 }
  0x6e   :  { %997 = vmatprep.subr.bf16.mxu0 %v4569_v18  ;;  %1038 = vmatprep.subr.bf16.mxu1 %v4571_v20  ;;  %v209_v18 = vld [vmem:[#allocation2 + $0x350] sm:$0xff]  ;;  %v4642_v20 = vcombine.low %v226_v5, %v230_v6 }
  0x6f   :  { %1027 = vmatprep.mubr.bf16.mxu0 %v5999_v61  ;;  %1068 = vmatprep.mubr.bf16.mxu1 %v5999_v61  ;;  %v4547_v61 = vcombine.high %v130_v37, %v134_v38  ;;  %v4625_v28 = vcombine.high %v209_v18, %v213_v19  ;;  %v194_v37 = vld [vmem:[#allocation2 + $0x2d8] sm:$0xff]  ;;  %v5201_v5 = vld [vmem:[#allocation5 + $0xe4] ss:$16 sps:$4 sm:$0xff]  }
  0x70   :  { %v198_v38 = vld [vmem:[#allocation2 + $0x2f8] sm:$0xff] }
  0x71   :  { %998 = vmatpush1.bf16.msra.mxu0 %v4568_v53  ;;  %1039 = vmatpush1.bf16.msra.mxu1 %v4570_v24  ;;  %v4635_v53 = vcombine.high %v218_v13, %v222_v15  ;;  %v4632_v24 = vcombine.low %v217_v9, %v221_v10  ;;  %v5199_v9 = vld [vmem:[#allocation5 + $0xe0] ss:$16 sps:$4 sm:$0xff]  }
  0x72   :  { %999 = vmatprep.subr.bf16.mxu0 %v4561_v25  ;;  %1040 = vmatprep.subr.bf16.mxu1 %v4563_v27  ;;  %v201_v25 = vld [vmem:[#allocation2 + $0x310] sm:$0xff]  ;;  %v4634_v27 = vcombine.low %v218_v13, %v222_v15 }
  0x73   :  { %v4617_v36 = vcombine.high %v201_v25, %v205_v26  ;;  %v5202_v10 = vld [vmem:[#allocation5 + $0x2e0] ss:$16 sps:$4 sm:$0xff]  }
  0x74   :  { %v5205_v13 = vld [vmem:[#allocation5 + $0xc0] ss:$16 sps:$4 sm:$0xff]  }
  0x75   :  { %1000 = vmatpush1.bf16.msra.mxu0 %v4560_v31  ;;  %1041 = vmatpush1.bf16.msra.mxu1 %v4562_v32  ;;  %v4627_v31 = vcombine.high %v210_v22, %v214_v23  ;;  %v4624_v32 = vcombine.low %v209_v18, %v213_v19  ;;  %v5208_v15 = vld [vmem:[#allocation5 + $0x2c0] ss:$16 sps:$4 sm:$0xff]  }
  0x76   :  { %1001 = vmatprep.subr.bf16.mxu0 %v4553_v33  ;;  %1042 = vmatprep.subr.bf16.mxu1 %v4555_v35  ;;  %v193_v33 = vld [vmem:[#allocation2 + $0x2d0] sm:$0xff]  ;;  %v4626_v35 = vcombine.low %v210_v22, %v214_v23 }
  0x77   :  { %v4609_v43 = vcombine.high %v193_v33, %v197_v34  ;;  %v4608_v47 = vcombine.low %v193_v33, %v197_v34  ;;  %v5211_v18 = vld [vmem:[#allocation5 + $0xa0] ss:$16 sps:$4 sm:$0xff]   ;;  %v5243_v34 = vld [vmem:[#allocation5 + $0x4] ss:$16 sps:$4 sm:$0xff]  }
  0x78   :  { %v5214_v19 = vld [vmem:[#allocation5 + $0x2a0] ss:$16 sps:$4 sm:$0xff]  }
  0x79   :  { %1002 = vmatpush1.bf16.msra.mxu0 %v4552_v39  ;;  %1043 = vmatpush1.bf16.msra.mxu1 %v4554_v40  ;;  %v4619_v39 = vcombine.high %v202_v29, %v206_v30  ;;  %v4616_v40 = vcombine.low %v201_v25, %v205_v26  ;;  %v5217_v22 = vld [vmem:[#allocation5 + $0x80] ss:$16 sps:$4 sm:$0xff]   ;;  %v5231_v26 = vld [vmem:[#allocation5 + $0x44] ss:$16 sps:$4 sm:$0xff]  }
  0x7a   :  { %1003 = vmatprep.subr.bf16.mxu0 %v4545_v41  ;;  %1044 = vmatprep.subr.bf16.mxu1 %v4547_v61  ;;  %v185_v41 = vld [vmem:[#allocation2 + $0x290] sm:$0xff]  ;;  %v4618_v61 = vcombine.low %v202_v29, %v206_v30 }
  0x7b   :  { %v4601_v51 = vcombine.high %v185_v41, %v189_v42  ;;  %v4600_v56 = vcombine.low %v185_v41, %v189_v42  ;;  %v5220_v23 = vld [vmem:[#allocation5 + $0x280] ss:$16 sps:$4 sm:$0xff]   ;;  %v5237_v30 = vld [vmem:[#allocation5 + $0x24] ss:$16 sps:$4 sm:$0xff]  }
  0x7c   :  { %v5226_v25 = vld [vmem:[#allocation5 + $0x260] ss:$16 sps:$4 sm:$0xff]   ;;  %v5255_v42 = vld [vmem:[#allocation5 + $0x1c4] ss:$16 sps:$4 sm:$0xff]  }
  0x7d   :  { %1004 = vmatpush1.bf16.msra.mxu0 %v4544_v46  ;;  %1045 = vmatpush1.bf16.msra.mxu1 %v4546_v49  ;;  %v4611_v46 = vcombine.high %v194_v37, %v198_v38  ;;  %v181_v49 = vld [vmem:[#allocation2 + $0x270] sm:$0xff] }
  0x7e   :  { %1005 = vmatprep.subr.bf16.mxu0 %v4537_v50  ;;  %1046 = vmatprep.subr.bf16.mxu1 %v4539_v54  ;;  %v4610_v50 = vcombine.low %v194_v37, %v198_v38  ;;  %v182_v54 = vld [vmem:[#allocation2 + $0x278] sm:$0xff]  ;;  %v4593_v60 = vcombine.high %v177_v48, %v181_v49  ;;  %v4592_v1 = vcombine.low %v177_v48, %v181_v49  ;;  %v5232_v29 = vld [vmem:[#allocation5 + $0x240] ss:$16 sps:$4 sm:$0xff]   ;;  %v5249_v38 = vld [vmem:[#allocation5 + $0x1e4] ss:$16 sps:$4 sm:$0xff]  }
  0x7f   :  { %v4594_v2 = vcombine.low %v178_v52, %v182_v54  ;;  %v5238_v33 = vld [vmem:[#allocation5 + $0x220] ss:$16 sps:$4 sm:$0xff]   ;;  %v5267_v49 = vld [vmem:[#allocation5 + $0x184] ss:$16 sps:$4 sm:$0xff]  }
  0x80   :  { %v5244_v37 = vld [vmem:[#allocation5 + $0x200] ss:$16 sps:$4 sm:$0xff]  }
  0x81   :  { %1006 = vmatpush1.bf16.msra.mxu0 %v4536_v55  ;;  %1047 = vmatpush1.bf16.msra.mxu1 %v4538_v58  ;;  %v4603_v55 = vcombine.high %v186_v44, %v190_v45  ;;  %v173_v58 = vld [vmem:[#allocation2 + $0x230] sm:$0xff] }
  0x82   :  { %1007 = vmatprep.subr.bf16.mxu0 %v4529_v59  ;;  %1048 = vmatprep.subr.bf16.mxu1 %v4531_v63  ;;  %v4602_v59 = vcombine.low %v186_v44, %v190_v45  ;;  %v174_v63 = vld [vmem:[#allocation2 + $0x238] sm:$0xff]  ;;  %v4584_v6 = vcombine.low %v169_v57, %v173_v58  ;;  %v5250_v41 = vld [vmem:[#allocation5 + $0x3e0] ss:$16 sps:$4 sm:$0xff]   ;;  %v5261_v45 = vld [vmem:[#allocation5 + $0x1a4] ss:$16 sps:$4 sm:$0xff]  }
  0x83   :  { %v5256_v44 = vld [vmem:[#allocation5 + $0x3c0] ss:$16 sps:$4 sm:$0xff]  }
  0x84   :  { %v5262_v48 = vld [vmem:[#allocation5 + $0x3a0] ss:$16 sps:$4 sm:$0xff]  }
  0x85   :  { %1008 = vmatpush1.bf16.msra.mxu0 %v4528_v0  ;;  %1049 = vmatpush1.bf16.msra.mxu1 %v4530_v3  ;;  %v4595_v0 = vcombine.high %v178_v52, %v182_v54  ;;  %v4585_v3 = vcombine.high %v169_v57, %v173_v58  ;;  %v5268_v52 = vld [vmem:[#allocation5 + $0x380] ss:$16 sps:$4 sm:$0xff]   ;;  %v5273_v54 = vld [vmem:[#allocation5 + $0x164] ss:$16 sps:$4 sm:$0xff]  }
  0x86   :  { %1009 = vmatprep.subr.bf16.mxu0 %v4521_v4  ;;  %1050 = vmatprep.subr.bf16.mxu1 %v4523_v7  ;;  %v4587_v4 = vcombine.high %v170_v62, %v174_v63  ;;  %v5204_v7 = vld [vmem:[#allocation5 + $0x2e4] ss:$16 sps:$4 sm:$0xff]   ;;  %v5274_v57 = vld [vmem:[#allocation5 + $0x360] ss:$16 sps:$4 sm:$0xff]  }
  0x87   :  { %v5279_v58 = vld [vmem:[#allocation5 + $0x144] ss:$16 sps:$4 sm:$0xff]  }
  0x89   :  { %1010 = vmatpush1.bf16.msra.mxu0 %v4520_v8  ;;  %1051 = vmatpush1.bf16.msra.mxu1 %v4522_v11  ;;  %v4586_v8 = vcombine.low %v170_v62, %v174_v63  ;;  %v5207_v11 = vld [vmem:[#allocation5 + $0xc4] ss:$16 sps:$4 sm:$0xff]   ;;  %v5280_v62 = vld [vmem:[#allocation5 + $0x340] ss:$16 sps:$4 sm:$0xff]  }
  0x8a   :  { %1011 = vmatprep.subr.bf16.mxu0 %v4641_v12  ;;  %1052 = vmatprep.subr.bf16.mxu1 %v4643_v16  ;;  %v5210_v12 = vld [vmem:[#allocation5 + $0x2c4] ss:$16 sps:$4 sm:$0xff]  }
  0x8b   :  { %v5213_v16 = vld [vmem:[#allocation5 + $0xa4] ss:$16 sps:$4 sm:$0xff]  }
  0x8c   :  { %v5285_v63 = vld [vmem:[#allocation5 + $0x124] ss:$16 sps:$4 sm:$0xff]  }
  0x8d   :  { %1012 = vmatpush2.bf16.msra.mxu0 %v4640_v17  ;;  %1053 = vmatpush2.bf16.msra.mxu1 %v4642_v20  ;;  %v5216_v17 = vld [vmem:[#allocation5 + $0x2a4] ss:$16 sps:$4 sm:$0xff]  }
  0x8e   :  { %1013 = vmatprep.subr.bf16.mxu0 %v4633_v21  ;;  %1054 = vmatprep.subr.bf16.mxu1 %v4635_v53  ;;  %v5219_v20 = vld [vmem:[#allocation5 + $0x84] ss:$16 sps:$4 sm:$0xff]  }
  0x8f   :  { %v5222_v21 = vld [vmem:[#allocation5 + $0x284] ss:$16 sps:$4 sm:$0xff]  }
  0x90   :  { %v5225_v53 = vld [vmem:[#allocation5 + $0x64] ss:$16 sps:$4 sm:$0xff]  }
  0x91   :  { %1014 = vmatpush2.bf16.msra.mxu0 %v4632_v24  ;;  %1055 = vmatpush2.bf16.msra.mxu1 %v4634_v27  ;;  %v5228_v24 = vld [vmem:[#allocation5 + $0x264] ss:$16 sps:$4 sm:$0xff]  }
  0x92   :  { %1015 = vmatprep.subr.bf16.mxu0 %v4625_v28  ;;  %1056 = vmatprep.subr.bf16.mxu1 %v4627_v31  ;;  %v5234_v27 = vld [vmem:[#allocation5 + $0x244] ss:$16 sps:$4 sm:$0xff]   ;;  %v5229_v28 = vld [vmem:[#allocation5 + $0x40] ss:$16 sps:$4 sm:$0xff]  }
  0x93   :  { %v5240_v31 = vld [vmem:[#allocation5 + $0x224] ss:$16 sps:$4 sm:$0xff]  }
  0x95   :  { %1016 = vmatpush2.bf16.msra.mxu0 %v4624_v32  ;;  %1057 = vmatpush2.bf16.msra.mxu1 %v4626_v35  ;;  %v5235_v32 = vld [vmem:[#allocation5 + $0x20] ss:$16 sps:$4 sm:$0xff]   ;;  %v5246_v35 = vld [vmem:[#allocation5 + $0x204] ss:$16 sps:$4 sm:$0xff]  }
  0x96   :  { %1017 = vmatprep.subr.bf16.mxu0 %v4617_v36  ;;  %1058 = vmatprep.subr.bf16.mxu1 %v4619_v39  ;;  %v5241_v36 = vld [vmem:[#allocation5] ss:$16 sps:$4 sm:$0xff]   ;;  %v5252_v39 = vld [vmem:[#allocation5 + $0x3e4] ss:$16 sps:$4 sm:$0xff]  }
  0x99   :  { %1018 = vmatpush2.bf16.msra.mxu0 %v4616_v40  ;;  %1059 = vmatpush2.bf16.msra.mxu1 %v4618_v61  ;;  %v5247_v40 = vld [vmem:[#allocation5 + $0x1e0] ss:$16 sps:$4 sm:$0xff]   ;;  %v5258_v61 = vld [vmem:[#allocation5 + $0x3c4] ss:$16 sps:$4 sm:$0xff]  }
  0x9a   :  { %1019 = vmatprep.subr.bf16.mxu0 %v4609_v43  ;;  %1060 = vmatprep.subr.bf16.mxu1 %v4611_v46  ;;  %v5253_v43 = vld [vmem:[#allocation5 + $0x1c0] ss:$16 sps:$4 sm:$0xff]   ;;  %v5264_v46 = vld [vmem:[#allocation5 + $0x3a4] ss:$16 sps:$4 sm:$0xff]  }
  0x9d   :  { %1020 = vmatpush2.bf16.msra.mxu0 %v4608_v47  ;;  %1061 = vmatpush2.bf16.msra.mxu1 %v4610_v50  ;;  %v5259_v47 = vld [vmem:[#allocation5 + $0x1a0] ss:$16 sps:$4 sm:$0xff]   ;;  %v5270_v50 = vld [vmem:[#allocation5 + $0x384] ss:$16 sps:$4 sm:$0xff]  }
  0x9e   :  { %1021 = vmatprep.subr.bf16.mxu0 %v4601_v51  ;;  %1062 = vmatprep.subr.bf16.mxu1 %v4603_v55  ;;  %v5265_v51 = vld [vmem:[#allocation5 + $0x180] ss:$16 sps:$4 sm:$0xff]   ;;  %v5276_v55 = vld [vmem:[#allocation5 + $0x364] ss:$16 sps:$4 sm:$0xff]  }
  0xa1   :  { %1022 = vmatpush2.bf16.msra.mxu0 %v4600_v56  ;;  %1063 = vmatpush2.bf16.msra.mxu1 %v4602_v59  ;;  %v5271_v56 = vld [vmem:[#allocation5 + $0x160] ss:$16 sps:$4 sm:$0xff]   ;;  %v5282_v59 = vld [vmem:[#allocation5 + $0x344] ss:$16 sps:$4 sm:$0xff]  }
  0xa2   :  { %1023 = vmatprep.subr.bf16.mxu0 %v4593_v60  ;;  %1064 = vmatprep.subr.bf16.mxu1 %v4595_v0  ;;  %v5277_v60 = vld [vmem:[#allocation5 + $0x140] ss:$16 sps:$4 sm:$0xff]   ;;  %v5288_v0 = vld [vmem:[#allocation5 + $0x324] ss:$16 sps:$4 sm:$0xff]  }
  0xa5   :  { %1024 = vmatpush2.bf16.msra.mxu0 %v4592_v1  ;;  %1065 = vmatpush2.bf16.msra.mxu1 %v4594_v2  ;;  %v5283_v1 = vld [vmem:[#allocation5 + $0x120] ss:$16 sps:$4 sm:$0xff]  }
  0xa6   :  { %1025 = vmatprep.subr.bf16.mxu0 %v4585_v3  ;;  %1066 = vmatprep.subr.bf16.mxu1 %v4587_v4  ;;  %v5286_v2 = vld [vmem:[#allocation5 + $0x320] ss:$16 sps:$4 sm:$0xff]   ;;  %v5291_v3 = vld [vmem:[#allocation5 + $0x104] ss:$16 sps:$4 sm:$0xff]  }
  0xa7   :  { %v5294_v4 = vld [vmem:[#allocation5 + $0x304] ss:$16 sps:$4 sm:$0xff]  }
  0xa9   :  { %1026 = vmatpush2.bf16.msra.mxu0 %v4584_v6  ;;  %1067 = vmatpush2.bf16.msra.mxu1 %v4586_v8  ;;  %v5292_v6 = vld [vmem:[#allocation5 + $0x300] ss:$16 sps:$4 sm:$0xff]   ;;  %v5300_v8 = vld [vmem:[#allocation5 + $0x6e4] ss:$16 sps:$4 sm:$0xff]  }
  0xaa   :  { %2651 = vmatprep.subr.bf16.mxu0 %v5201_v5  ;;  %2692 = vmatprep.subr.bf16.mxu1 %v5204_v7  ;;  %v5289_v5 = vld [vmem:[#allocation5 + $0x100] ss:$16 sps:$4 sm:$0xff]   ;;  %v5297_v7 = vld [vmem:[#allocation5 + $0x4e4] ss:$16 sps:$4 sm:$0xff]  }
  0xac   :  { %1028 = vmatmul.mubr.bf16.vlgmr.msra.gmra.mxu0 %v6005_v14  ;;  %1069 = vmatmul.mubr.bf16.vlgmr.msra.gmra.mxu1 %v6005_v14  ;;  %v5223_v14 = vld [vmem:[#allocation5 + $0x60] ss:$16 sps:$4 sm:$0xff]  }
  0xad   :  { %2652 = vmatpush1.bf16.msra.mxu0 %v5199_v9  ;;  %2693 = vmatpush1.bf16.msra.mxu1 %v5202_v10  ;;  %v233_v9 = vlaneseq }
  0xae   :  { %2653 = vmatprep.subr.bf16.mxu0 %v5207_v11  ;;  %2694 = vmatprep.subr.bf16.mxu1 %v5210_v12  ;;  %v6021_v12 = vld [vmem:[%s6334_s2] sm:$0xff] }
  0xaf   :  { %v6013_v10 = vshrl.u32 %v233_v9, 7  ;;  %v5346_v9 = vld [vmem:[#allocation5 + $0x7e0] ss:$16 sps:$4 sm:$0xff]  }
  0xb1   :  { %2654 = vmatpush1.bf16.msra.mxu0 %v5205_v13  ;;  %2695 = vmatpush1.bf16.msra.mxu1 %v5208_v15  ;;  %v6016_v11 = vsub.s32 0, %v6013_v10  ;;  %v6024_v13 = vsub.s32 2, %v6013_v10  ;;  %v6027_v15 = vsub.s32 1, %v6013_v10 }
  0xb2   :  { %2655 = vmatprep.subr.bf16.mxu0 %v5213_v16  ;;  %2696 = vmatprep.subr.bf16.mxu1 %v5216_v17  ;;  %v6030_v16 = vsub.s32 3, %v6013_v10 }
  0xb3   :  { %v236_v17 = vrot.slane %v6021_v12, %v6016_v11 }
  0xb5   :  { %2656 = vmatpush1.bf16.msra.mxu0 %v5211_v18  ;;  %2697 = vmatpush1.bf16.msra.mxu1 %v5214_v19  ;;  %v244_v18 = vrot.slane %v6021_v12, %v6024_v13  ;;  %v240_v19 = vrot.slane %v6021_v12, %v6027_v15 }
  0xb6   :  { %2657 = vmatprep.subr.bf16.mxu0 %v5219_v20  ;;  %2698 = vmatprep.subr.bf16.mxu1 %v5222_v21  ;;  %v248_v21 = vrot.slane %v6021_v12, %v6030_v16 }
  0xb9   :  { %2658 = vmatpush1.bf16.msra.mxu0 %v5217_v22  ;;  %2699 = vmatpush1.bf16.msra.mxu1 %v5220_v23 }
  0xba   :  { %2659 = vmatprep.subr.bf16.mxu0 %v5225_v53  ;;  %2700 = vmatprep.subr.bf16.mxu1 %v5228_v24 }
  0xbd   :  { %2660 = vmatpush1.bf16.msra.mxu0 %v5223_v14  ;;  %2701 = vmatpush1.bf16.msra.mxu1 %v5226_v25 }
  0xbe   :  { %2661 = vmatprep.subr.bf16.mxu0 %v5231_v26  ;;  %2702 = vmatprep.subr.bf16.mxu1 %v5234_v27 }
  0xc1   :  { %2662 = vmatpush1.bf16.msra.mxu0 %v5229_v28  ;;  %2703 = vmatpush1.bf16.msra.mxu1 %v5232_v29 }
  0xc2   :  { %2663 = vmatprep.subr.bf16.mxu0 %v5237_v30  ;;  %2704 = vmatprep.subr.bf16.mxu1 %v5240_v31 }
  0xc5   :  { %2664 = vmatpush1.bf16.msra.mxu0 %v5235_v32  ;;  %2705 = vmatpush1.bf16.msra.mxu1 %v5238_v33 }
  0xc6   :  { %2665 = vmatprep.subr.bf16.mxu0 %v5243_v34  ;;  %2706 = vmatprep.subr.bf16.mxu1 %v5246_v35 }
  0xc9   :  { %2666 = vmatpush1.bf16.msra.mxu0 %v5241_v36  ;;  %2707 = vmatpush1.bf16.msra.mxu1 %v5244_v37  ;;  %v5295_v37 = vld [vmem:[#allocation5 + $0x4e0] ss:$16 sps:$4 sm:$0xff]  }
  0xca   :  { %2667 = vmatprep.subr.bf16.mxu0 %v5249_v38  ;;  %2708 = vmatprep.subr.bf16.mxu1 %v5252_v39 }
  0xcd   :  { %2668 = vmatpush2.bf16.msra.mxu0 %v5247_v40  ;;  %2709 = vmatpush2.bf16.msra.mxu1 %v5250_v41  ;;  %v5298_v40 = vld [vmem:[#allocation5 + $0x6e0] ss:$16 sps:$4 sm:$0xff]   ;;  %v5303_v41 = vld [vmem:[#allocation5 + $0x4c4] ss:$16 sps:$4 sm:$0xff]  }
  0xce   :  { %2669 = vmatprep.subr.bf16.mxu0 %v5255_v42  ;;  %2710 = vmatprep.subr.bf16.mxu1 %v5258_v61  ;;  %v5306_v42 = vld [vmem:[#allocation5 + $0x6c4] ss:$16 sps:$4 sm:$0xff]   ;;  %v5301_v61 = vld [vmem:[#allocation5 + $0x4c0] ss:$16 sps:$4 sm:$0xff]  }
  0xd1   :  { %2670 = vmatpush2.bf16.msra.mxu0 %v5253_v43  ;;  %2711 = vmatpush2.bf16.msra.mxu1 %v5256_v44  ;;  %v5304_v43 = vld [vmem:[#allocation5 + $0x6c0] ss:$16 sps:$4 sm:$0xff]   ;;  %v5309_v44 = vld [vmem:[#allocation5 + $0x4a4] ss:$16 sps:$4 sm:$0xff]  }
  0xd2   :  { %2671 = vmatprep.subr.bf16.mxu0 %v5261_v45  ;;  %2712 = vmatprep.subr.bf16.mxu1 %v5264_v46  ;;  %v5312_v45 = vld [vmem:[#allocation5 + $0x6a4] ss:$16 sps:$4 sm:$0xff]   ;;  %v5307_v46 = vld [vmem:[#allocation5 + $0x4a0] ss:$16 sps:$4 sm:$0xff]  }
  0xd5   :  { %2672 = vmatpush2.bf16.msra.mxu0 %v5259_v47  ;;  %2713 = vmatpush2.bf16.msra.mxu1 %v5262_v48  ;;  %v5310_v47 = vld [vmem:[#allocation5 + $0x6a0] ss:$16 sps:$4 sm:$0xff]   ;;  %v5315_v48 = vld [vmem:[#allocation5 + $0x484] ss:$16 sps:$4 sm:$0xff]  }
  0xd6   :  { %2673 = vmatprep.subr.bf16.mxu0 %v5267_v49  ;;  %2714 = vmatprep.subr.bf16.mxu1 %v5270_v50  ;;  %v5318_v49 = vld [vmem:[#allocation5 + $0x684] ss:$16 sps:$4 sm:$0xff]   ;;  %v5313_v50 = vld [vmem:[#allocation5 + $0x480] ss:$16 sps:$4 sm:$0xff]  }
  0xd9   :  { %2674 = vmatpush2.bf16.msra.mxu0 %v5265_v51  ;;  %2715 = vmatpush2.bf16.msra.mxu1 %v5268_v52  ;;  %v5316_v51 = vld [vmem:[#allocation5 + $0x680] ss:$16 sps:$4 sm:$0xff]   ;;  %v5321_v52 = vld [vmem:[#allocation5 + $0x464] ss:$16 sps:$4 sm:$0xff]  }
  0xda   :  { %2675 = vmatprep.subr.bf16.mxu0 %v5273_v54  ;;  %2716 = vmatprep.subr.bf16.mxu1 %v5276_v55  ;;  %v5324_v54 = vld [vmem:[#allocation5 + $0x664] ss:$16 sps:$4 sm:$0xff]   ;;  %v5319_v55 = vld [vmem:[#allocation5 + $0x460] ss:$16 sps:$4 sm:$0xff]  }
  0xdd   :  { %2676 = vmatpush2.bf16.msra.mxu0 %v5271_v56  ;;  %2717 = vmatpush2.bf16.msra.mxu1 %v5274_v57  ;;  %v5322_v56 = vld [vmem:[#allocation5 + $0x660] ss:$16 sps:$4 sm:$0xff]   ;;  %v5327_v57 = vld [vmem:[#allocation5 + $0x444] ss:$16 sps:$4 sm:$0xff]  }
  0xde   :  { %2677 = vmatprep.subr.bf16.mxu0 %v5279_v58  ;;  %2718 = vmatprep.subr.bf16.mxu1 %v5282_v59  ;;  %v5330_v58 = vld [vmem:[#allocation5 + $0x644] ss:$16 sps:$4 sm:$0xff]   ;;  %v5325_v59 = vld [vmem:[#allocation5 + $0x440] ss:$16 sps:$4 sm:$0xff]  }
  0xe1   :  { %2678 = vmatpush2.bf16.msra.mxu0 %v5277_v60  ;;  %2719 = vmatpush2.bf16.msra.mxu1 %v5280_v62  ;;  %v5328_v60 = vld [vmem:[#allocation5 + $0x640] ss:$16 sps:$4 sm:$0xff]   ;;  %v5333_v62 = vld [vmem:[#allocation5 + $0x424] ss:$16 sps:$4 sm:$0xff]  }
  0xe2   :  { %2679 = vmatprep.subr.bf16.mxu0 %v5285_v63  ;;  %2720 = vmatprep.subr.bf16.mxu1 %v5288_v0  ;;  %v5336_v63 = vld [vmem:[#allocation5 + $0x624] ss:$16 sps:$4 sm:$0xff]   ;;  %v5331_v0 = vld [vmem:[#allocation5 + $0x420] ss:$16 sps:$4 sm:$0xff]  }
  0xe5   :  { %2680 = vmatpush2.bf16.msra.mxu0 %v5283_v1  ;;  %2721 = vmatpush2.bf16.msra.mxu1 %v5286_v2  ;;  %v5334_v1 = vld [vmem:[#allocation5 + $0x620] ss:$16 sps:$4 sm:$0xff]   ;;  %v5339_v2 = vld [vmem:[#allocation5 + $0x404] ss:$16 sps:$4 sm:$0xff]  }
  0xe6   :  { %2681 = vmatprep.subr.bf16.mxu0 %v5291_v3  ;;  %2722 = vmatprep.subr.bf16.mxu1 %v5294_v4  ;;  %v5342_v3 = vld [vmem:[#allocation5 + $0x604] ss:$16 sps:$4 sm:$0xff]   ;;  %v5337_v4 = vld [vmem:[#allocation5 + $0x400] ss:$16 sps:$4 sm:$0xff]  }
  0xe9   :  { %2682 = vmatpush2.bf16.msra.mxu0 %v5289_v5  ;;  %2723 = vmatpush2.bf16.msra.mxu1 %v5292_v6  ;;  %v5340_v5 = vld [vmem:[#allocation5 + $0x600] ss:$16 sps:$4 sm:$0xff]   ;;  %v5345_v6 = vld [vmem:[#allocation5 + $0x5e4] ss:$16 sps:$4 sm:$0xff]  }
  0xea   :  { %2733 = vmatprep.subr.bf16.mxu0 %v5297_v7  ;;  %2774 = vmatprep.subr.bf16.mxu1 %v5300_v8  ;;  %v5348_v7 = vld [vmem:[#allocation5 + $0x7e4] ss:$16 sps:$4 sm:$0xff]   ;;  %v5343_v8 = vld [vmem:[#allocation5 + $0x5e0] ss:$16 sps:$4 sm:$0xff]  }
 0x12c   :  { %v947_v20 = vpop.f32.mrf.mxu0  ;;  %v988_v23 = vpop.f32.mrf.mxu1 }
 0x12d   :  { %v948_v22 = vadd.f32 %v947_v20, %v236_v17  ;;  %v989_v53 = vadd.f32 %v988_v23, %v244_v18  ;;  %v5351_v17 = vld [vmem:[#allocation5 + $0x5c4] ss:$16 sps:$4 sm:$0xff]   ;;  %v5352_v20 = vld [vmem:[#allocation5 + $0x7c0] ss:$16 sps:$4 sm:$0xff]  }
 0x12e   :  { %v949_v24 = vpop.f32.mrf.mxu0  ;;  %v990_v25 = vpop.f32.mrf.mxu1  ;;  %v5354_v18 = vld [vmem:[#allocation5 + $0x7c4] ss:$16 sps:$4 sm:$0xff]   ;;  %v5355_v23 = vld [vmem:[#allocation5 + $0x5a0] ss:$16 sps:$4 sm:$0xff]  }
 0x12f   :  { %v950_v14 = vadd.f32 %v949_v24, %v240_v19  ;;  %v1077_v26 = vmax.f32 %v948_v22, 0.0  ;;  %v1079_v27 = vmax.f32 %v989_v53, 0.0  ;;  %v991_v28 = vadd.f32 %v990_v25, %v248_v21  ;;  %v5349_v19 = vld [vmem:[#allocation5 + $0x5c0] ss:$16 sps:$4 sm:$0xff]   ;;  %v5357_v21 = vld [vmem:[#allocation5 + $0x5a4] ss:$16 sps:$4 sm:$0xff]  }
 0x130   :  { %v951_v29 = vpop.f32.mrf.mxu0  ;;  %v992_v31 = vpop.f32.mrf.mxu1  ;;  %v5360_v22 = vld [vmem:[#allocation5 + $0x7a4] ss:$16 sps:$4 sm:$0xff]   ;;  %v5358_v53 = vld [vmem:[#allocation5 + $0x7a0] ss:$16 sps:$4 sm:$0xff]  }
 0x131   :  { %v1078_v30 = vmax.f32 %v950_v14, 0.0  ;;  %v1080_v32 = vmax.f32 %v991_v28, 0.0  ;;  %v6040_v34 = vpack.c.bf16 %v1079_v27, %v1079_v27  ;;  %v6044_v38 = vpack.c.bf16 %v1077_v26, %v1077_v26  ;;  %v5363_v24 = vld [vmem:[#allocation5 + $0x584] ss:$16 sps:$4 sm:$0xff]   ;;  %v5361_v25 = vld [vmem:[#allocation5 + $0x580] ss:$16 sps:$4 sm:$0xff]  }
 0x132   :  { %v952_v33 = vpop.f32.mrf.mxu0  ;;  %v993_v36 = vpop.f32.mrf.mxu1  ;;  %v5366_v14 = vld [vmem:[#allocation5 + $0x784] ss:$16 sps:$4 sm:$0xff]   ;;  %v5364_v26 = vld [vmem:[#allocation5 + $0x780] ss:$16 sps:$4 sm:$0xff]  }
 0x133   :  { %v6042_v35 = vpack.c.bf16 %v1078_v30, %v1078_v30  ;;  %v6046_v39 = vpack.c.bf16 %v1080_v32, %v1080_v32  ;;  %v5369_v27 = vld [vmem:[#allocation5 + $0x564] ss:$16 sps:$4 sm:$0xff]   ;;  %v5367_v29 = vld [vmem:[#allocation5 + $0x560] ss:$16 sps:$4 sm:$0xff]   ;;  %v251_v33 = vsub.s32 4, %v6013_v10  ;;  %v259_v36 = vsub.s32 6, %v6013_v10 }
 0x134   :  { %v5372_v28 = vld [vmem:[#allocation5 + $0x764] ss:$16 sps:$4 sm:$0xff]   ;;  %v5370_v30 = vld [vmem:[#allocation5 + $0x760] ss:$16 sps:$4 sm:$0xff]  }
 0x135   :  { %2683 = vmatprep.mubr.bf16.mxu0 %v6042_v35  ;;  %2724 = vmatprep.mubr.bf16.mxu1 %v6046_v39  ;;  %v5375_v31 = vld [vmem:[#allocation5 + $0x544] ss:$16 sps:$4 sm:$0xff]  }
 0x136   :  { %2684 = vmatmul.mubr.bf16.vlgmr.msra.gmra.mxu0 %v6044_v38  ;;  %2725 = vmatmul.mubr.bf16.vlgmr.msra.gmra.mxu1 %v6040_v34  ;;  %v5378_v32 = vld [vmem:[#allocation5 + $0x744] ss:$16 sps:$4 sm:$0xff]  }
 0x137   :  { %2734 = vmatpush1.bf16.msra.mxu0 %v5295_v37  ;;  %2775 = vmatpush1.bf16.msra.mxu1 %v5298_v40  ;;  %v5373_v37 = vld [vmem:[#allocation5 + $0x540] ss:$16 sps:$4 sm:$0xff]   ;;  %v255_v40 = vsub.s32 5, %v6013_v10 }
 0x138   :  { %2735 = vmatprep.subr.bf16.mxu0 %v5303_v41  ;;  %2776 = vmatprep.subr.bf16.mxu1 %v5306_v42  ;;  %v5376_v41 = vld [vmem:[#allocation5 + $0x740] ss:$16 sps:$4 sm:$0xff]   ;;  %v5381_v42 = vld [vmem:[#allocation5 + $0x524] ss:$16 sps:$4 sm:$0xff]  }
 0x13b   :  { %2736 = vmatpush1.bf16.msra.mxu0 %v5301_v61  ;;  %2777 = vmatpush1.bf16.msra.mxu1 %v5304_v43  ;;  %v263_v61 = vsub.s32 7, %v6013_v10  ;;  %v252_v43 = vrot.slane %v6021_v12, %v251_v33  ;;  %v5390_v10 = vld [vmem:[#allocation5 + $0x704] ss:$16 sps:$4 sm:$0xff]   ;;  %v5423_v33 = vld [vmem:[#allocation5 + $0x4c] ss:$16 sps:$4 sm:$0xff]  }
 0x13c   :  { %2737 = vmatprep.subr.bf16.mxu0 %v5309_v44  ;;  %2778 = vmatprep.subr.bf16.mxu1 %v5312_v45  ;;  %v5384_v44 = vld [vmem:[#allocation5 + $0x724] ss:$16 sps:$4 sm:$0xff]   ;;  %v260_v45 = vrot.slane %v6021_v12, %v259_v36  ;;  %v5426_v36 = vld [vmem:[#allocation5 + $0x24c] ss:$16 sps:$4 sm:$0xff]  }
 0x13f   :  { %2738 = vmatpush1.bf16.msra.mxu0 %v5307_v46  ;;  %2779 = vmatpush1.bf16.msra.mxu1 %v5310_v47  ;;  %v5379_v46 = vld [vmem:[#allocation5 + $0x520] ss:$16 sps:$4 sm:$0xff]   ;;  %v256_v47 = vrot.slane %v6021_v12, %v255_v40  ;;  %v5424_v40 = vld [vmem:[#allocation5 + $0x248] ss:$16 sps:$4 sm:$0xff]  }
 0x140   :  { %2739 = vmatprep.subr.bf16.mxu0 %v5315_v48  ;;  %2780 = vmatprep.subr.bf16.mxu1 %v5318_v49  ;;  %v5382_v49 = vld [vmem:[#allocation5 + $0x720] ss:$16 sps:$4 sm:$0xff]  }
 0x143   :  { %2740 = vmatpush1.bf16.msra.mxu0 %v5313_v50  ;;  %2781 = vmatpush1.bf16.msra.mxu1 %v5316_v51  ;;  %v264_v50 = vrot.slane %v6021_v12, %v263_v61  ;;  %v5387_v51 = vld [vmem:[#allocation5 + $0x504] ss:$16 sps:$4 sm:$0xff]   ;;  %v5427_v61 = vld [vmem:[#allocation5 + $0x28] ss:$16 sps:$4 sm:$0xff]  }
 0x144   :  { %2741 = vmatprep.subr.bf16.mxu0 %v5321_v52  ;;  %2782 = vmatprep.subr.bf16.mxu1 %v5324_v54 }
 0x147   :  { %2742 = vmatpush1.bf16.msra.mxu0 %v5319_v55  ;;  %2783 = vmatpush1.bf16.msra.mxu1 %v5322_v56 }
 0x148   :  { %2743 = vmatprep.subr.bf16.mxu0 %v5327_v57  ;;  %2784 = vmatprep.subr.bf16.mxu1 %v5330_v58 }
 0x14b   :  { %2744 = vmatpush1.bf16.msra.mxu0 %v5325_v59  ;;  %2785 = vmatpush1.bf16.msra.mxu1 %v5328_v60  ;;  %v5385_v59 = vld [vmem:[#allocation5 + $0x500] ss:$16 sps:$4 sm:$0xff]  }
 0x14c   :  { %2745 = vmatprep.subr.bf16.mxu0 %v5333_v62  ;;  %2786 = vmatprep.subr.bf16.mxu1 %v5336_v63 }
 0x14f   :  { %2746 = vmatpush1.bf16.msra.mxu0 %v5331_v0  ;;  %2787 = vmatpush1.bf16.msra.mxu1 %v5334_v1  ;;  %v5388_v1 = vld [vmem:[#allocation5 + $0x700] ss:$16 sps:$4 sm:$0xff]  }
 0x150   :  { %2747 = vmatprep.subr.bf16.mxu0 %v5339_v2  ;;  %2788 = vmatprep.subr.bf16.mxu1 %v5342_v3  ;;  %v5393_v2 = vld [vmem:[#allocation5 + $0xec] ss:$16 sps:$4 sm:$0xff]  }
 0x153   :  { %2748 = vmatpush1.bf16.msra.mxu0 %v5337_v4  ;;  %2789 = vmatpush1.bf16.msra.mxu1 %v5340_v5  ;;  %v5396_v4 = vld [vmem:[#allocation5 + $0x2ec] ss:$16 sps:$4 sm:$0xff]  }
 0x154   :  { %2749 = vmatprep.subr.bf16.mxu0 %v5345_v6  ;;  %2790 = vmatprep.subr.bf16.mxu1 %v5348_v7 }
 0x157   :  { %2750 = vmatpush2.bf16.msra.mxu0 %v5343_v8  ;;  %2791 = vmatpush2.bf16.msra.mxu1 %v5346_v9 }
 0x158   :  { %2751 = vmatprep.subr.bf16.mxu0 %v5351_v17  ;;  %2792 = vmatprep.subr.bf16.mxu1 %v5354_v18  ;;  %v5391_v17 = vld [vmem:[#allocation5 + $0xe8] ss:$16 sps:$4 sm:$0xff]  }
 0x15b   :  { %2752 = vmatpush2.bf16.msra.mxu0 %v5349_v19  ;;  %2793 = vmatpush2.bf16.msra.mxu1 %v5352_v20  ;;  %v5394_v20 = vld [vmem:[#allocation5 + $0x2e8] ss:$16 sps:$4 sm:$0xff]  }
 0x15c   :  { %2753 = vmatprep.subr.bf16.mxu0 %v5357_v21  ;;  %2794 = vmatprep.subr.bf16.mxu1 %v5360_v22  ;;  %v5399_v21 = vld [vmem:[#allocation5 + $0xcc] ss:$16 sps:$4 sm:$0xff]  }
 0x15d   :  { %v5402_v22 = vld [vmem:[#allocation5 + $0x2cc] ss:$16 sps:$4 sm:$0xff]  }
 0x15f   :  { %2754 = vmatpush2.bf16.msra.mxu0 %v5355_v23  ;;  %2795 = vmatpush2.bf16.msra.mxu1 %v5358_v53  ;;  %v5397_v23 = vld [vmem:[#allocation5 + $0xc8] ss:$16 sps:$4 sm:$0xff]  }
 0x160   :  { %2755 = vmatprep.subr.bf16.mxu0 %v5363_v24  ;;  %2796 = vmatprep.subr.bf16.mxu1 %v5366_v14  ;;  %v5400_v53 = vld [vmem:[#allocation5 + $0x2c8] ss:$16 sps:$4 sm:$0xff]   ;;  %v5405_v24 = vld [vmem:[#allocation5 + $0xac] ss:$16 sps:$4 sm:$0xff]  }
 0x161   :  { %v5408_v14 = vld [vmem:[#allocation5 + $0x2ac] ss:$16 sps:$4 sm:$0xff]  }
 0x163   :  { %2756 = vmatpush2.bf16.msra.mxu0 %v5361_v25  ;;  %2797 = vmatpush2.bf16.msra.mxu1 %v5364_v26  ;;  %v5403_v25 = vld [vmem:[#allocation5 + $0xa8] ss:$16 sps:$4 sm:$0xff]  }
 0x164   :  { %2757 = vmatprep.subr.bf16.mxu0 %v5369_v27  ;;  %2798 = vmatprep.subr.bf16.mxu1 %v5372_v28  ;;  %v5406_v26 = vld [vmem:[#allocation5 + $0x2a8] ss:$16 sps:$4 sm:$0xff]   ;;  %v5411_v27 = vld [vmem:[#allocation5 + $0x8c] ss:$16 sps:$4 sm:$0xff]  }
 0x165   :  { %v5414_v28 = vld [vmem:[#allocation5 + $0x28c] ss:$16 sps:$4 sm:$0xff]  }
 0x167   :  { %2758 = vmatpush2.bf16.msra.mxu0 %v5367_v29  ;;  %2799 = vmatpush2.bf16.msra.mxu1 %v5370_v30  ;;  %v5409_v29 = vld [vmem:[#allocation5 + $0x88] ss:$16 sps:$4 sm:$0xff]   ;;  %v5417_v30 = vld [vmem:[#allocation5 + $0x6c] ss:$16 sps:$4 sm:$0xff]  }
 0x168   :  { %2759 = vmatprep.subr.bf16.mxu0 %v5375_v31  ;;  %2800 = vmatprep.subr.bf16.mxu1 %v5378_v32  ;;  %v5420_v31 = vld [vmem:[#allocation5 + $0x26c] ss:$16 sps:$4 sm:$0xff]   ;;  %v5418_v32 = vld [vmem:[#allocation5 + $0x268] ss:$16 sps:$4 sm:$0xff]  }
 0x16b   :  { %2760 = vmatpush2.bf16.msra.mxu0 %v5373_v37  ;;  %2801 = vmatpush2.bf16.msra.mxu1 %v5376_v41  ;;  %v5421_v37 = vld [vmem:[#allocation5 + $0x48] ss:$16 sps:$4 sm:$0xff]   ;;  %v5429_v41 = vld [vmem:[#allocation5 + $0x2c] ss:$16 sps:$4 sm:$0xff]  }
 0x16c   :  { %v1029_v48 = vpop.f32.mrf.mxu0  ;;  %2761 = vmatprep.subr.bf16.mxu0 %v5381_v42  ;;  %v1070_v54 = vpop.f32.mrf.mxu1  ;;  %2802 = vmatprep.subr.bf16.mxu1 %v5384_v44  ;;  %v5432_v42 = vld [vmem:[#allocation5 + $0x22c] ss:$16 sps:$4 sm:$0xff]  }
 0x16d   :  { %v1030_v52 = vadd.f32 %v1029_v48, %v252_v43  ;;  %v1071_v55 = vadd.f32 %v1070_v54, %v260_v45  ;;  %v5430_v43 = vld [vmem:[#allocation5 + $0x228] ss:$16 sps:$4 sm:$0xff]   ;;  %v5435_v44 = vld [vmem:[#allocation5 + $0xc] ss:$16 sps:$4 sm:$0xff]  }
 0x16e   :  { %v1031_v56 = vpop.f32.mrf.mxu0  ;;  %v1072_v58 = vpop.f32.mrf.mxu1  ;;  %v5438_v45 = vld [vmem:[#allocation5 + $0x20c] ss:$16 sps:$4 sm:$0xff]  }
 0x16f   :  { %v1032_v57 = vadd.f32 %v1031_v56, %v256_v47  ;;  %2762 = vmatpush2.bf16.msra.mxu0 %v5379_v46  ;;  %v1081_v60 = vmax.f32 %v1030_v52, 0.0  ;;  %v1083_v62 = vmax.f32 %v1071_v55, 0.0  ;;  %v1073_v63 = vadd.f32 %v1072_v58, %v264_v50  ;;  %2803 = vmatpush2.bf16.msra.mxu1 %v5382_v49  ;;  %v5433_v46 = vld [vmem:[#allocation5 + $0x8] ss:$16 sps:$4 sm:$0xff]   ;;  %v5441_v48 = vld [vmem:[#allocation5 + $0x1ec] ss:$16 sps:$4 sm:$0xff]  }
 0x170   :  { %v1033_v0 = vpop.f32.mrf.mxu0  ;;  %2763 = vmatprep.subr.bf16.mxu0 %v5387_v51  ;;  %v1074_v3 = vpop.f32.mrf.mxu1  ;;  %2804 = vmatprep.subr.bf16.mxu1 %v5390_v10  ;;  %v5436_v47 = vld [vmem:[#allocation5 + $0x208] ss:$16 sps:$4 sm:$0xff]   ;;  %v5444_v49 = vld [vmem:[#allocation5 + $0x3ec] ss:$16 sps:$4 sm:$0xff]  }
 0x171   :  { %v1082_v12 = vmax.f32 %v1032_v57, 0.0  ;;  %v1084_v5 = vmax.f32 %v1073_v63, 0.0  ;;  %v6060_v7 = vpack.c.bf16 %v1083_v62, %v1083_v62  ;;  %v6064_v18 = vpack.c.bf16 %v1081_v60, %v1081_v60  ;;  %v5439_v50 = vld [vmem:[#allocation5 + $0x1e8] ss:$16 sps:$4 sm:$0xff]   ;;  %v5447_v52 = vld [vmem:[#allocation5 + $0x1cc] ss:$16 sps:$4 sm:$0xff]  }
 0x172   :  { %v1034_v6 = vpop.f32.mrf.mxu0  ;;  %v1075_v9 = vpop.f32.mrf.mxu1  ;;  %v5442_v51 = vld [vmem:[#allocation5 + $0x3e8] ss:$16 sps:$4 sm:$0xff]   ;;  %v5450_v54 = vld [vmem:[#allocation5 + $0x3cc] ss:$16 sps:$4 sm:$0xff]  }
 0x173   :  { %v6062_v8 = vpack.c.bf16 %v1082_v12, %v1082_v12  ;;  %2764 = vmatpush2.bf16.msra.mxu0 %v5385_v59  ;;  %v6066_v19 = vpack.c.bf16 %v1084_v5, %v1084_v5  ;;  %2805 = vmatpush2.bf16.msra.mxu1 %v5388_v1  ;;  %v5445_v10 = vld [vmem:[#allocation5 + $0x1c8] ss:$16 sps:$4 sm:$0xff]   ;;  %v5453_v56 = vld [vmem:[#allocation5 + $0x1ac] ss:$16 sps:$4 sm:$0xff]  }
 0x174   :  { %2815 = vmatprep.subr.bf16.mxu0 %v5393_v2  ;;  %2856 = vmatprep.subr.bf16.mxu1 %v5396_v4  ;;  %v5448_v55 = vld [vmem:[#allocation5 + $0x3c8] ss:$16 sps:$4 sm:$0xff]   ;;  %v5456_v57 = vld [vmem:[#allocation5 + $0x3ac] ss:$16 sps:$4 sm:$0xff]  }
 0x175   :  { %2765 = vmatprep.mubr.bf16.mxu0 %v6062_v8  ;;  %2806 = vmatprep.mubr.bf16.mxu1 %v6066_v19  ;;  %v5451_v58 = vld [vmem:[#allocation5 + $0x1a8] ss:$16 sps:$4 sm:$0xff]   ;;  %v5459_v60 = vld [vmem:[#allocation5 + $0x18c] ss:$16 sps:$4 sm:$0xff]  }
 0x176   :  { %2766 = vmatmul.mubr.bf16.vlgmr.msra.gmra.mxu0 %v6064_v18  ;;  %2807 = vmatmul.mubr.bf16.vlgmr.msra.gmra.mxu1 %v6060_v7  ;;  %v5454_v59 = vld [vmem:[#allocation5 + $0x3a8] ss:$16 sps:$4 sm:$0xff]   ;;  %v5462_v62 = vld [vmem:[#allocation5 + $0x38c] ss:$16 sps:$4 sm:$0xff]  }
 0x177   :  { %2816 = vmatpush1.bf16.msra.mxu0 %v5391_v17  ;;  %2857 = vmatpush1.bf16.msra.mxu1 %v5394_v20  ;;  %v5457_v63 = vld [vmem:[#allocation5 + $0x188] ss:$16 sps:$4 sm:$0xff]   ;;  %v5465_v1 = vld [vmem:[#allocation5 + $0x16c] ss:$16 sps:$4 sm:$0xff]  }
 0x178   :  { %2847 = vmatprep.mubr.bf16.mxu0 %v6042_v35  ;;  %2888 = vmatprep.mubr.bf16.mxu1 %v6046_v39  ;;  %v5412_v35 = vld [vmem:[#allocation5 + $0x288] ss:$16 sps:$4 sm:$0xff]   ;;  %v5468_v2 = vld [vmem:[#allocation5 + $0x36c] ss:$16 sps:$4 sm:$0xff]  }
 0x179   :  { %2817 = vmatprep.subr.bf16.mxu0 %v5399_v21  ;;  %2858 = vmatprep.subr.bf16.mxu1 %v5402_v22  ;;  %v5415_v39 = vld [vmem:[#allocation5 + $0x68] ss:$16 sps:$4 sm:$0xff]   ;;  %v5471_v4 = vld [vmem:[#allocation5 + $0x14c] ss:$16 sps:$4 sm:$0xff]  }
 0x17a   :  { %v5460_v0 = vld [vmem:[#allocation5 + $0x388] ss:$16 sps:$4 sm:$0xff]   ;;  %v5474_v5 = vld [vmem:[#allocation5 + $0x34c] ss:$16 sps:$4 sm:$0xff]  }
 0x17b   :  { %2818 = vmatpush1.bf16.msra.mxu0 %v5397_v23  ;;  %2859 = vmatpush1.bf16.msra.mxu1 %v5400_v53  ;;  %v5463_v12 = vld [vmem:[#allocation5 + $0x168] ss:$16 sps:$4 sm:$0xff]   ;;  %v5477_v17 = vld [vmem:[#allocation5 + $0x12c] ss:$16 sps:$4 sm:$0xff]  }
 0x17c   :  { %2819 = vmatprep.subr.bf16.mxu0 %v5405_v24  ;;  %2860 = vmatprep.subr.bf16.mxu1 %v5408_v14  ;;  %v5466_v3 = vld [vmem:[#allocation5 + $0x368] ss:$16 sps:$4 sm:$0xff]   ;;  %v5480_v20 = vld [vmem:[#allocation5 + $0x32c] ss:$16 sps:$4 sm:$0xff]  }
 0x17d   :  { %v5469_v6 = vld [vmem:[#allocation5 + $0x148] ss:$16 sps:$4 sm:$0xff]   ;;  %v5483_v23 = vld [vmem:[#allocation5 + $0x10c] ss:$16 sps:$4 sm:$0xff]  }
 0x17e   :  { %v5472_v9 = vld [vmem:[#allocation5 + $0x348] ss:$16 sps:$4 sm:$0xff]   ;;  %v5486_v53 = vld [vmem:[#allocation5 + $0x30c] ss:$16 sps:$4 sm:$0xff]  }
 0x17f   :  { %2820 = vmatpush1.bf16.msra.mxu0 %v5403_v25  ;;  %2861 = vmatpush1.bf16.msra.mxu1 %v5406_v26  ;;  %v5475_v21 = vld [vmem:[#allocation5 + $0x128] ss:$16 sps:$4 sm:$0xff]   ;;  %v5489_v25 = vld [vmem:[#allocation5 + $0x4ec] ss:$16 sps:$4 sm:$0xff]  }
 0x180   :  { %2821 = vmatprep.subr.bf16.mxu0 %v5411_v27  ;;  %2862 = vmatprep.subr.bf16.mxu1 %v5414_v28  ;;  %v5478_v22 = vld [vmem:[#allocation5 + $0x328] ss:$16 sps:$4 sm:$0xff]   ;;  %v5492_v26 = vld [vmem:[#allocation5 + $0x6ec] ss:$16 sps:$4 sm:$0xff]  }
 0x181   :  { %v5481_v24 = vld [vmem:[#allocation5 + $0x108] ss:$16 sps:$4 sm:$0xff]  }
 0x182   :  { %v5484_v14 = vld [vmem:[#allocation5 + $0x308] ss:$16 sps:$4 sm:$0xff]  }
 0x183   :  { %2822 = vmatpush1.bf16.msra.mxu0 %v5409_v29  ;;  %2863 = vmatpush1.bf16.msra.mxu1 %v5412_v35  ;;  %v5487_v27 = vld [vmem:[#allocation5 + $0x4e8] ss:$16 sps:$4 sm:$0xff]   ;;  %v5495_v29 = vld [vmem:[#allocation5 + $0x4cc] ss:$16 sps:$4 sm:$0xff]  }
 0x184   :  { %2823 = vmatprep.subr.bf16.mxu0 %v5417_v30  ;;  %2864 = vmatprep.subr.bf16.mxu1 %v5420_v31  ;;  %v5490_v28 = vld [vmem:[#allocation5 + $0x6e8] ss:$16 sps:$4 sm:$0xff]   ;;  %v5498_v35 = vld [vmem:[#allocation5 + $0x6cc] ss:$16 sps:$4 sm:$0xff]  }
 0x185   :  { %v5493_v30 = vld [vmem:[#allocation5 + $0x4c8] ss:$16 sps:$4 sm:$0xff]  }
 0x186   :  { %v5496_v31 = vld [vmem:[#allocation5 + $0x6c8] ss:$16 sps:$4 sm:$0xff]  }
 0x187   :  { %2824 = vmatpush1.bf16.msra.mxu0 %v5415_v39  ;;  %2865 = vmatpush1.bf16.msra.mxu1 %v5418_v32  ;;  %v5501_v39 = vld [vmem:[#allocation5 + $0x4ac] ss:$16 sps:$4 sm:$0xff]  }
 0x188   :  { %2825 = vmatprep.subr.bf16.mxu0 %v5423_v33  ;;  %2866 = vmatprep.subr.bf16.mxu1 %v5426_v36  ;;  %v5504_v32 = vld [vmem:[#allocation5 + $0x6ac] ss:$16 sps:$4 sm:$0xff]   ;;  %v5499_v33 = vld [vmem:[#allocation5 + $0x4a8] ss:$16 sps:$4 sm:$0xff]  }
 0x189   :  { %v5507_v36 = vld [vmem:[#allocation5 + $0x48c] ss:$16 sps:$4 sm:$0xff]  }
 0x18b   :  { %2826 = vmatpush1.bf16.msra.mxu0 %v5421_v37  ;;  %2867 = vmatpush1.bf16.msra.mxu1 %v5424_v40  ;;  %v5505_v37 = vld [vmem:[#allocation5 + $0x488] ss:$16 sps:$4 sm:$0xff]   ;;  %v5513_v40 = vld [vmem:[#allocation5 + $0x46c] ss:$16 sps:$4 sm:$0xff]  }
 0x18c   :  { %2827 = vmatprep.subr.bf16.mxu0 %v5429_v41  ;;  %2868 = vmatprep.subr.bf16.mxu1 %v5432_v42  ;;  %v5516_v41 = vld [vmem:[#allocation5 + $0x66c] ss:$16 sps:$4 sm:$0xff]   ;;  %v5514_v42 = vld [vmem:[#allocation5 + $0x668] ss:$16 sps:$4 sm:$0xff]  }
 0x18f   :  { %2828 = vmatpush1.bf16.msra.mxu0 %v5427_v61  ;;  %2869 = vmatpush1.bf16.msra.mxu1 %v5430_v43  ;;  %v5519_v61 = vld [vmem:[#allocation5 + $0x44c] ss:$16 sps:$4 sm:$0xff]  }
 0x190   :  { %2829 = vmatprep.subr.bf16.mxu0 %v5435_v44  ;;  %2870 = vmatprep.subr.bf16.mxu1 %v5438_v45  ;;  %v5522_v43 = vld [vmem:[#allocation5 + $0x64c] ss:$16 sps:$4 sm:$0xff]   ;;  %v5517_v44 = vld [vmem:[#allocation5 + $0x448] ss:$16 sps:$4 sm:$0xff]  }
 0x191   :  { %v5520_v45 = vld [vmem:[#allocation5 + $0x648] ss:$16 sps:$4 sm:$0xff]  }
 0x193   :  { %2830 = vmatpush1.bf16.msra.mxu0 %v5433_v46  ;;  %2871 = vmatpush1.bf16.msra.mxu1 %v5436_v47  ;;  %v5525_v46 = vld [vmem:[#allocation5 + $0x42c] ss:$16 sps:$4 sm:$0xff]  }
 0x194   :  { %2831 = vmatprep.subr.bf16.mxu0 %v5441_v48  ;;  %2872 = vmatprep.subr.bf16.mxu1 %v5444_v49  ;;  %v5528_v47 = vld [vmem:[#allocation5 + $0x62c] ss:$16 sps:$4 sm:$0xff]   ;;  %v5523_v48 = vld [vmem:[#allocation5 + $0x428] ss:$16 sps:$4 sm:$0xff]  }
 0x195   :  { %v5526_v49 = vld [vmem:[#allocation5 + $0x628] ss:$16 sps:$4 sm:$0xff]  }
 0x197   :  { %2832 = vmatpush2.bf16.msra.mxu0 %v5439_v50  ;;  %2873 = vmatpush2.bf16.msra.mxu1 %v5442_v51  ;;  %v5531_v50 = vld [vmem:[#allocation5 + $0x40c] ss:$16 sps:$4 sm:$0xff]  }
 0x198   :  { %2833 = vmatprep.subr.bf16.mxu0 %v5447_v52  ;;  %2874 = vmatprep.subr.bf16.mxu1 %v5450_v54  ;;  %v5534_v51 = vld [vmem:[#allocation5 + $0x60c] ss:$16 sps:$4 sm:$0xff]   ;;  %v5529_v52 = vld [vmem:[#allocation5 + $0x408] ss:$16 sps:$4 sm:$0xff]  }
 0x199   :  { %v5532_v54 = vld [vmem:[#allocation5 + $0x608] ss:$16 sps:$4 sm:$0xff]  }
 0x19b   :  { %2834 = vmatpush2.bf16.msra.mxu0 %v5445_v10  ;;  %2875 = vmatpush2.bf16.msra.mxu1 %v5448_v55  ;;  %v5537_v10 = vld [vmem:[#allocation5 + $0x5ec] ss:$16 sps:$4 sm:$0xff]  }
 0x19c   :  { %2835 = vmatprep.subr.bf16.mxu0 %v5453_v56  ;;  %2876 = vmatprep.subr.bf16.mxu1 %v5456_v57  ;;  %v5540_v55 = vld [vmem:[#allocation5 + $0x7ec] ss:$16 sps:$4 sm:$0xff]   ;;  %v5535_v56 = vld [vmem:[#allocation5 + $0x5e8] ss:$16 sps:$4 sm:$0xff]  }
 0x19d   :  { %v5538_v57 = vld [vmem:[#allocation5 + $0x7e8] ss:$16 sps:$4 sm:$0xff]  }
 0x19f   :  { %2836 = vmatpush2.bf16.msra.mxu0 %v5451_v58  ;;  %2877 = vmatpush2.bf16.msra.mxu1 %v5454_v59  ;;  %v5543_v58 = vld [vmem:[#allocation5 + $0x5cc] ss:$16 sps:$4 sm:$0xff]  }
 0x1a0   :  { %2837 = vmatprep.subr.bf16.mxu0 %v5459_v60  ;;  %2878 = vmatprep.subr.bf16.mxu1 %v5462_v62  ;;  %v5546_v59 = vld [vmem:[#allocation5 + $0x7cc] ss:$16 sps:$4 sm:$0xff]   ;;  %v5541_v60 = vld [vmem:[#allocation5 + $0x5c8] ss:$16 sps:$4 sm:$0xff]  }
 0x1a1   :  { %v5544_v62 = vld [vmem:[#allocation5 + $0x7c8] ss:$16 sps:$4 sm:$0xff]  }
 0x1a3   :  { %2838 = vmatpush2.bf16.msra.mxu0 %v5457_v63  ;;  %2879 = vmatpush2.bf16.msra.mxu1 %v5460_v0  ;;  %v5549_v63 = vld [vmem:[#allocation5 + $0x5ac] ss:$16 sps:$4 sm:$0xff]  }
 0x1a4   :  { %2839 = vmatprep.subr.bf16.mxu0 %v5465_v1  ;;  %2880 = vmatprep.subr.bf16.mxu1 %v5468_v2  ;;  %v5552_v0 = vld [vmem:[#allocation5 + $0x7ac] ss:$16 sps:$4 sm:$0xff]   ;;  %v5547_v1 = vld [vmem:[#allocation5 + $0x5a8] ss:$16 sps:$4 sm:$0xff]  }
 0x1a5   :  { %v5550_v2 = vld [vmem:[#allocation5 + $0x7a8] ss:$16 sps:$4 sm:$0xff]  }
 0x1a7   :  { %2840 = vmatpush2.bf16.msra.mxu0 %v5463_v12  ;;  %2881 = vmatpush2.bf16.msra.mxu1 %v5466_v3  ;;  %v5555_v12 = vld [vmem:[#allocation5 + $0x58c] ss:$16 sps:$4 sm:$0xff]  }
 0x1a8   :  { %2841 = vmatprep.subr.bf16.mxu0 %v5471_v4  ;;  %2882 = vmatprep.subr.bf16.mxu1 %v5474_v5  ;;  %v5558_v3 = vld [vmem:[#allocation5 + $0x78c] ss:$16 sps:$4 sm:$0xff]   ;;  %v5553_v4 = vld [vmem:[#allocation5 + $0x588] ss:$16 sps:$4 sm:$0xff]  }
 0x1a9   :  { %v5556_v5 = vld [vmem:[#allocation5 + $0x788] ss:$16 sps:$4 sm:$0xff]  }
 0x1ab   :  { %2842 = vmatpush2.bf16.msra.mxu0 %v5469_v6  ;;  %2883 = vmatpush2.bf16.msra.mxu1 %v5472_v9  ;;  %v5561_v6 = vld [vmem:[#allocation5 + $0x56c] ss:$16 sps:$4 sm:$0xff]  }
 0x1ac   :  { %2843 = vmatprep.subr.bf16.mxu0 %v5477_v17  ;;  %2884 = vmatprep.subr.bf16.mxu1 %v5480_v20  ;;  %v5564_v9 = vld [vmem:[#allocation5 + $0x76c] ss:$16 sps:$4 sm:$0xff]   ;;  %v5559_v17 = vld [vmem:[#allocation5 + $0x568] ss:$16 sps:$4 sm:$0xff]  }
 0x1ad   :  { %v5562_v20 = vld [vmem:[#allocation5 + $0x768] ss:$16 sps:$4 sm:$0xff]  }
 0x1af   :  { %2844 = vmatpush2.bf16.msra.mxu0 %v5475_v21  ;;  %2885 = vmatpush2.bf16.msra.mxu1 %v5478_v22  ;;  %v5567_v21 = vld [vmem:[#allocation5 + $0x54c] ss:$16 sps:$4 sm:$0xff]  }
 0x1b0   :  { %2845 = vmatprep.subr.bf16.mxu0 %v5483_v23  ;;  %2886 = vmatprep.subr.bf16.mxu1 %v5486_v53  ;;  %v5570_v22 = vld [vmem:[#allocation5 + $0x74c] ss:$16 sps:$4 sm:$0xff]   ;;  %v5565_v23 = vld [vmem:[#allocation5 + $0x548] ss:$16 sps:$4 sm:$0xff]  }
 0x1b1   :  { %v5568_v53 = vld [vmem:[#allocation5 + $0x748] ss:$16 sps:$4 sm:$0xff]  }
 0x1b3   :  { %2846 = vmatpush2.bf16.msra.mxu0 %v5481_v24  ;;  %2887 = vmatpush2.bf16.msra.mxu1 %v5484_v14  ;;  %v5573_v24 = vld [vmem:[#allocation5 + $0x52c] ss:$16 sps:$4 sm:$0xff]  }
 0x1b4   :  { %2897 = vmatprep.subr.bf16.mxu0 %v5489_v25  ;;  %2938 = vmatprep.subr.bf16.mxu1 %v5492_v26  ;;  %v5576_v14 = vld [vmem:[#allocation5 + $0x72c] ss:$16 sps:$4 sm:$0xff]   ;;  %v5571_v25 = vld [vmem:[#allocation5 + $0x528] ss:$16 sps:$4 sm:$0xff]  }
 0x1b5   :  { %v5574_v26 = vld [vmem:[#allocation5 + $0x728] ss:$16 sps:$4 sm:$0xff]  }
 0x1b6   :  { %2848 = vmatmul.mubr.bf16.vlgmr.msra.gmra.mxu0 %v6044_v38  ;;  %2889 = vmatmul.mubr.bf16.vlgmr.msra.gmra.mxu1 %v6040_v34  ;;  %v5502_v38 = vld [vmem:[#allocation5 + $0x6a8] ss:$16 sps:$4 sm:$0xff]   ;;  %v5510_v34 = vld [vmem:[#allocation5 + $0x68c] ss:$16 sps:$4 sm:$0xff]  }
 0x1b7   :  { %2898 = vmatpush1.bf16.msra.mxu0 %v5487_v27  ;;  %2929 = vmatprep.mubr.bf16.mxu0 %v6062_v8  ;;  %v5508_v8 = vld [vmem:[#allocation5 + $0x688] ss:$16 sps:$4 sm:$0xff]   ;;  %v5579_v27 = vld [vmem:[#allocation5 + $0x50c] ss:$16 sps:$4 sm:$0xff]  }
 0x1b8   :  { %2939 = vmatpush1.bf16.msra.mxu1 %v5490_v28  ;;  %2970 = vmatprep.mubr.bf16.mxu1 %v6066_v19  ;;  %v5511_v19 = vld [vmem:[#allocation5 + $0x468] ss:$16 sps:$4 sm:$0xff]   ;;  %v5582_v28 = vld [vmem:[#allocation5 + $0x70c] ss:$16 sps:$4 sm:$0xff]  }
 0x1b9   :  { %2899 = vmatprep.subr.bf16.mxu0 %v5495_v29  ;;  %2940 = vmatprep.subr.bf16.mxu1 %v5498_v35  ;;  %v5577_v29 = vld [vmem:[#allocation5 + $0x508] ss:$16 sps:$4 sm:$0xff]  }
 0x1ba   :  { %v5580_v35 = vld [vmem:[#allocation5 + $0x708] ss:$16 sps:$4 sm:$0xff]  }
 0x1bb   :  { %2900 = vmatpush1.bf16.msra.mxu0 %v5493_v30  ;;  %v5585_v30 = vld [vmem:[#allocation7 + $0xe4] ss:$16 sps:$4 sm:$0xff]  }
 0x1bc   :  { %2941 = vmatpush1.bf16.msra.mxu1 %v5496_v31  ;;  %2901 = vmatprep.subr.bf16.mxu0 %v5501_v39  ;;  %v5583_v31 = vld [vmem:[#allocation7 + $0xe0] ss:$16 sps:$4 sm:$0xff]   ;;  %v5588_v39 = vld [vmem:[#allocation7 + $0xc4] ss:$16 sps:$4 sm:$0xff]  }
 0x1bd   :  { %2942 = vmatprep.subr.bf16.mxu1 %v5504_v32 }
 0x1bf   :  { %2902 = vmatpush1.bf16.msra.mxu0 %v5499_v33 }
 0x1c0   :  { %2943 = vmatpush1.bf16.msra.mxu1 %v5502_v38  ;;  %2903 = vmatprep.subr.bf16.mxu0 %v5507_v36  ;;  %v5586_v38 = vld [vmem:[#allocation7 + $0xc0] ss:$16 sps:$4 sm:$0xff]  }
 0x1c1   :  { %2944 = vmatprep.subr.bf16.mxu1 %v5510_v34  ;;  %v5591_v34 = vld [vmem:[#allocation7 + $0xa4] ss:$16 sps:$4 sm:$0xff]  }
 0x1c3   :  { %2904 = vmatpush1.bf16.msra.mxu0 %v5505_v37 }
 0x1c4   :  { %2945 = vmatpush1.bf16.msra.mxu1 %v5508_v8  ;;  %2905 = vmatprep.subr.bf16.mxu0 %v5513_v40 }
 0x1c5   :  { %2946 = vmatprep.subr.bf16.mxu1 %v5516_v41  ;;  %v5589_v41 = vld [vmem:[#allocation7 + $0xa0] ss:$16 sps:$4 sm:$0xff]  }
 0x1c7   :  { %2906 = vmatpush1.bf16.msra.mxu0 %v5511_v19 }
 0x1c8   :  { %2947 = vmatpush1.bf16.msra.mxu1 %v5514_v42  ;;  %2907 = vmatprep.subr.bf16.mxu0 %v5519_v61  ;;  %v5679_v61 = vld [vmem:[#allocation7 + $0x2e0] ss:$16 sps:$4 sm:$0xff]  }
 0x1c9   :  { %2948 = vmatprep.subr.bf16.mxu1 %v5522_v43  ;;  %v5681_v43 = vld [vmem:[#allocation7 + $0x2e4] ss:$16 sps:$4 sm:$0xff]  }
 0x1cb   :  { %2908 = vmatpush1.bf16.msra.mxu0 %v5517_v44  ;;  %v5597_v44 = vld [vmem:[#allocation7 + $0x64] ss:$16 sps:$4 sm:$0xff]  }
 0x1cc   :  { %2949 = vmatpush1.bf16.msra.mxu1 %v5520_v45  ;;  %2909 = vmatprep.subr.bf16.mxu0 %v5525_v46  ;;  %v5682_v45 = vld [vmem:[#allocation7 + $0x2c0] ss:$16 sps:$4 sm:$0xff]   ;;  %v5684_v46 = vld [vmem:[#allocation7 + $0x2c4] ss:$16 sps:$4 sm:$0xff]  }
 0x1cd   :  { %2950 = vmatprep.subr.bf16.mxu1 %v5528_v47  ;;  %v5595_v47 = vld [vmem:[#allocation7 + $0x60] ss:$16 sps:$4 sm:$0xff]  }
 0x1cf   :  { %2910 = vmatpush1.bf16.msra.mxu0 %v5523_v48  ;;  %v5687_v48 = vld [vmem:[#allocation7 + $0x2a4] ss:$16 sps:$4 sm:$0xff]  }
 0x1d0   :  { %2951 = vmatpush1.bf16.msra.mxu1 %v5526_v49  ;;  %2911 = vmatprep.subr.bf16.mxu0 %v5531_v50  ;;  %v5600_v49 = vld [vmem:[#allocation7 + $0x44] ss:$16 sps:$4 sm:$0xff]   ;;  %v5685_v50 = vld [vmem:[#allocation7 + $0x2a0] ss:$16 sps:$4 sm:$0xff]  }
 0x1d1   :  { %2952 = vmatprep.subr.bf16.mxu1 %v5534_v51  ;;  %v5598_v51 = vld [vmem:[#allocation7 + $0x40] ss:$16 sps:$4 sm:$0xff]  }
 0x1d3   :  { %2912 = vmatpush1.bf16.msra.mxu0 %v5529_v52  ;;  %v5690_v52 = vld [vmem:[#allocation7 + $0x284] ss:$16 sps:$4 sm:$0xff]  }
 0x1d4   :  { %2953 = vmatpush1.bf16.msra.mxu1 %v5532_v54  ;;  %2913 = vmatprep.subr.bf16.mxu0 %v5537_v10  ;;  %v5603_v54 = vld [vmem:[#allocation7 + $0x24] ss:$16 sps:$4 sm:$0xff]   ;;  %v5688_v10 = vld [vmem:[#allocation7 + $0x280] ss:$16 sps:$4 sm:$0xff]  }
 0x1d5   :  { %2954 = vmatprep.subr.bf16.mxu1 %v5540_v55  ;;  %v5601_v55 = vld [vmem:[#allocation7 + $0x20] ss:$16 sps:$4 sm:$0xff]  }
 0x1d7   :  { %2914 = vmatpush2.bf16.msra.mxu0 %v5535_v56  ;;  %v5693_v56 = vld [vmem:[#allocation7 + $0x264] ss:$16 sps:$4 sm:$0xff]  }
 0x1d8   :  { %2955 = vmatpush2.bf16.msra.mxu1 %v5538_v57  ;;  %2915 = vmatprep.subr.bf16.mxu0 %v5543_v58  ;;  %v5606_v57 = vld [vmem:[#allocation7 + $0x4] ss:$16 sps:$4 sm:$0xff]   ;;  %v5691_v58 = vld [vmem:[#allocation7 + $0x260] ss:$16 sps:$4 sm:$0xff]  }
 0x1d9   :  { %2956 = vmatprep.subr.bf16.mxu1 %v5546_v59  ;;  %v5604_v59 = vld [vmem:[#allocation7] ss:$16 sps:$4 sm:$0xff]  }
 0x1db   :  { %2916 = vmatpush2.bf16.msra.mxu0 %v5541_v60  ;;  %v5696_v60 = vld [vmem:[#allocation7 + $0x244] ss:$16 sps:$4 sm:$0xff]  }
 0x1dc   :  { %2957 = vmatpush2.bf16.msra.mxu1 %v5544_v62  ;;  %2917 = vmatprep.subr.bf16.mxu0 %v5549_v63  ;;  %v5609_v62 = vld [vmem:[#allocation7 + $0x1e4] ss:$16 sps:$4 sm:$0xff]   ;;  %v5694_v63 = vld [vmem:[#allocation7 + $0x240] ss:$16 sps:$4 sm:$0xff]  }
 0x1dd   :  { %2958 = vmatprep.subr.bf16.mxu1 %v5552_v0  ;;  %v5607_v0 = vld [vmem:[#allocation7 + $0x1e0] ss:$16 sps:$4 sm:$0xff]  }
 0x1df   :  { %2918 = vmatpush2.bf16.msra.mxu0 %v5547_v1  ;;  %v5699_v1 = vld [vmem:[#allocation7 + $0x224] ss:$16 sps:$4 sm:$0xff]  }
 0x1e0   :  { %2959 = vmatpush2.bf16.msra.mxu1 %v5550_v2  ;;  %2919 = vmatprep.subr.bf16.mxu0 %v5555_v12  ;;  %v5612_v2 = vld [vmem:[#allocation7 + $0x1c4] ss:$16 sps:$4 sm:$0xff]   ;;  %v5697_v12 = vld [vmem:[#allocation7 + $0x220] ss:$16 sps:$4 sm:$0xff]  }
 0x1e1   :  { %2960 = vmatprep.subr.bf16.mxu1 %v5558_v3  ;;  %v5610_v3 = vld [vmem:[#allocation7 + $0x1c0] ss:$16 sps:$4 sm:$0xff]  }
 0x1e3   :  { %2920 = vmatpush2.bf16.msra.mxu0 %v5553_v4  ;;  %v5702_v4 = vld [vmem:[#allocation7 + $0x204] ss:$16 sps:$4 sm:$0xff]  }
 0x1e4   :  { %2961 = vmatpush2.bf16.msra.mxu1 %v5556_v5  ;;  %2921 = vmatprep.subr.bf16.mxu0 %v5561_v6  ;;  %v5615_v5 = vld [vmem:[#allocation7 + $0x1a4] ss:$16 sps:$4 sm:$0xff]   ;;  %v5700_v6 = vld [vmem:[#allocation7 + $0x200] ss:$16 sps:$4 sm:$0xff]  }
 0x1e5   :  { %2962 = vmatprep.subr.bf16.mxu1 %v5564_v9  ;;  %v5613_v9 = vld [vmem:[#allocation7 + $0x1a0] ss:$16 sps:$4 sm:$0xff]  }
 0x1e7   :  { %2922 = vmatpush2.bf16.msra.mxu0 %v5559_v17  ;;  %v5705_v17 = vld [vmem:[#allocation7 + $0x3e4] ss:$16 sps:$4 sm:$0xff]  }
 0x1e8   :  { %2963 = vmatpush2.bf16.msra.mxu1 %v5562_v20  ;;  %2923 = vmatprep.subr.bf16.mxu0 %v5567_v21  ;;  %v5618_v20 = vld [vmem:[#allocation7 + $0x184] ss:$16 sps:$4 sm:$0xff]   ;;  %v5703_v21 = vld [vmem:[#allocation7 + $0x3e0] ss:$16 sps:$4 sm:$0xff]  }
 0x1e9   :  { %2964 = vmatprep.subr.bf16.mxu1 %v5570_v22  ;;  %v5616_v22 = vld [vmem:[#allocation7 + $0x180] ss:$16 sps:$4 sm:$0xff]  }
 0x1eb   :  { %2924 = vmatpush2.bf16.msra.mxu0 %v5565_v23  ;;  %v5708_v23 = vld [vmem:[#allocation7 + $0x3c4] ss:$16 sps:$4 sm:$0xff]  }
 0x1ec   :  { %2965 = vmatpush2.bf16.msra.mxu1 %v5568_v53  ;;  %2925 = vmatprep.subr.bf16.mxu0 %v5573_v24  ;;  %v5621_v53 = vld [vmem:[#allocation7 + $0x164] ss:$16 sps:$4 sm:$0xff]   ;;  %v5706_v24 = vld [vmem:[#allocation7 + $0x3c0] ss:$16 sps:$4 sm:$0xff]  }
 0x1ed   :  { %2966 = vmatprep.subr.bf16.mxu1 %v5576_v14  ;;  %v5619_v14 = vld [vmem:[#allocation7 + $0x160] ss:$16 sps:$4 sm:$0xff]  }
 0x1ef   :  { %2926 = vmatpush2.bf16.msra.mxu0 %v5571_v25  ;;  %v5711_v25 = vld [vmem:[#allocation7 + $0x3a4] ss:$16 sps:$4 sm:$0xff]  }
 0x1f0   :  { %2967 = vmatpush2.bf16.msra.mxu1 %v5574_v26  ;;  %2927 = vmatprep.subr.bf16.mxu0 %v5579_v27  ;;  %v5624_v26 = vld [vmem:[#allocation7 + $0x144] ss:$16 sps:$4 sm:$0xff]   ;;  %v5709_v27 = vld [vmem:[#allocation7 + $0x3a0] ss:$16 sps:$4 sm:$0xff]  }
 0x1f1   :  { %2968 = vmatprep.subr.bf16.mxu1 %v5582_v28  ;;  %v5622_v28 = vld [vmem:[#allocation7 + $0x140] ss:$16 sps:$4 sm:$0xff]  }
 0x1f3   :  { %2928 = vmatpush2.bf16.msra.mxu0 %v5577_v29  ;;  %v5714_v29 = vld [vmem:[#allocation7 + $0x384] ss:$16 sps:$4 sm:$0xff]  }
 0x1f4   :  { %2969 = vmatpush2.bf16.msra.mxu1 %v5580_v35  ;;  %3777 = vmatprep.subr.bf16.mxu0 %v5585_v30  ;;  %v5627_v35 = vld [vmem:[#allocation7 + $0x124] ss:$16 sps:$4 sm:$0xff]   ;;  %v6091_v30 = vld [vmem:[%s6336_s4] sm:$0xf] }
 0x1f5   :  { %3818 = vmatprep.subr.bf16.mxu1 %v5681_v43 }
 0x1f6   :  { %2930 = vmatmul.mubr.bf16.vlgmr.msra.gmra.mxu0 %v6064_v18  ;;  %v6079_v32 = vpop.f32.mrf.mxu0  ;;  %v6082_v33 = vpop.f32.mrf.mxu1  ;;  %v5594_v18 = vld [vmem:[#allocation7 + $0x84] ss:$16 sps:$4 sm:$0xff]  }
 0x1f7   :  { %2971 = vmatmul.mubr.bf16.vlgmr.msra.gmra.mxu1 %v6060_v7  ;;  %3778 = vmatpush1.bf16.msra.mxu0 %v5583_v31  ;;  %v5592_v7 = vld [vmem:[#allocation7 + $0x80] ss:$16 sps:$4 sm:$0xff]  }
 0x1f8   :  { %v6084_v36 = vpop.f32.mrf.mxu0  ;;  %3779 = vmatprep.subr.bf16.mxu0 %v5588_v39  ;;  %v6086_v37 = vpop.f32.mrf.mxu1  ;;  %3819 = vmatpush1.bf16.msra.mxu1 %v5679_v61  ;;  %v5712_v31 = vld [vmem:[#allocation7 + $0x380] ss:$16 sps:$4 sm:$0xff]  }
 0x1f9   :  { %3820 = vmatprep.subr.bf16.mxu1 %v5684_v46  ;;  %v5625_v39 = vld [vmem:[#allocation7 + $0x120] ss:$16 sps:$4 sm:$0xff]  }
 0x1fa   :  { %v2689_v8 = vpop.f32.mrf.mxu0  ;;  %v2730_v40 = vpop.f32.mrf.mxu1  ;;  %v5718_v61 = vld [vmem:[#allocation7 + $0x340] ss:$16 sps:$4 sm:$0xff]  }
 0x1fb   :  { %3780 = vmatpush1.bf16.msra.mxu0 %v5586_v38  ;;  %v5717_v38 = vld [vmem:[#allocation7 + $0x364] ss:$16 sps:$4 sm:$0xff]   ;;  %v1354_v8 = vrot.slane %v6091_v30, %v6016_v11  ;;  %v5715_v40 = vld [vmem:[#allocation7 + $0x360] ss:$16 sps:$4 sm:$0xff]  }
 0x1fc   :  { %v2690_v19 = vpop.f32.mrf.mxu0  ;;  %3781 = vmatprep.subr.bf16.mxu0 %v5591_v34  ;;  %v2731_v42 = vpop.f32.mrf.mxu1  ;;  %3821 = vmatpush1.bf16.msra.mxu1 %v5682_v45  ;;  %v5630_v34 = vld [vmem:[#allocation7 + $0x104] ss:$16 sps:$4 sm:$0xff]  }
 0x1fd   :  { %3822 = vmatprep.subr.bf16.mxu1 %v5687_v48  ;;  %v5628_v19 = vld [vmem:[#allocation7 + $0x100] ss:$16 sps:$4 sm:$0xff]   ;;  %v5633_v42 = vld [vmem:[#allocation7 + $0xec] ss:$16 sps:$4 sm:$0xff]  }
 0x1ff   :  { %3782 = vmatpush1.bf16.msra.mxu0 %v5589_v41  ;;  %v1358_v41 = vrot.slane %v6091_v30, %v6027_v15 }
 0x200   :  { %3783 = vmatprep.subr.bf16.mxu0 %v5594_v18  ;;  %3823 = vmatpush1.bf16.msra.mxu1 %v5685_v50  ;;  %v5720_v18 = vld [vmem:[#allocation7 + $0x344] ss:$16 sps:$4 sm:$0xff]  }
 0x201   :  { %3824 = vmatprep.subr.bf16.mxu1 %v5690_v52  ;;  %v2688_v43 = vadd.f32 %v6084_v36, %v1358_v41 }
 0x203   :  { %3784 = vmatpush1.bf16.msra.mxu0 %v5592_v7  ;;  %v2686_v7 = vadd.f32 %v6079_v32, %v1354_v8  ;;  %v2729_v46 = vadd.f32 %v6086_v37, %v2688_v43  ;;  %v5723_v32 = vld [vmem:[#allocation7 + $0x324] ss:$16 sps:$4 sm:$0xff]   ;;  %v5675_v8 = vld [vmem:[#allocation7 + $0x12c] ss:$16 sps:$4 sm:$0xff]  }
 0x204   :  { %3785 = vmatprep.subr.bf16.mxu0 %v5597_v44  ;;  %3825 = vmatpush1.bf16.msra.mxu1 %v5688_v10  ;;  %v5721_v10 = vld [vmem:[#allocation7 + $0x320] ss:$16 sps:$4 sm:$0xff]  }
 0x205   :  { %3826 = vmatprep.subr.bf16.mxu1 %v5693_v56  ;;  %v2727_v44 = vadd.f32 %v6082_v33, %v2686_v7 }
 0x207   :  { %3786 = vmatpush1.bf16.msra.mxu0 %v5595_v47 }
 0x208   :  { %3787 = vmatprep.subr.bf16.mxu0 %v5600_v49  ;;  %3827 = vmatpush1.bf16.msra.mxu1 %v5691_v58 }
 0x209   :  { %3828 = vmatprep.subr.bf16.mxu1 %v5696_v60  ;;  %v5724_v60 = vld [vmem:[#allocation7 + $0x300] ss:$16 sps:$4 sm:$0xff]  }
 0x20b   :  { %3788 = vmatpush1.bf16.msra.mxu0 %v5598_v51 }
 0x20c   :  { %3789 = vmatprep.subr.bf16.mxu0 %v5603_v54  ;;  %3829 = vmatpush1.bf16.msra.mxu1 %v5694_v63 }
 0x20d   :  { %3830 = vmatprep.subr.bf16.mxu1 %v5699_v1  ;;  %v5729_v1 = vld [vmem:[#allocation7 + $0x2ec] ss:$16 sps:$4 sm:$0xff]  }
 0x20f   :  { %3790 = vmatpush1.bf16.msra.mxu0 %v5601_v55 }
 0x210   :  { %3791 = vmatprep.subr.bf16.mxu0 %v5606_v57  ;;  %3831 = vmatpush1.bf16.msra.mxu1 %v5697_v12  ;;  %v5639_v12 = vld [vmem:[#allocation7 + $0xac] ss:$16 sps:$4 sm:$0xff]  }
 0x211   :  { %3832 = vmatprep.subr.bf16.mxu1 %v5702_v4  ;;  %v5642_v4 = vld [vmem:[#allocation7 + $0x8c] ss:$16 sps:$4 sm:$0xff]  }
 0x213   :  { %3792 = vmatpush1.bf16.msra.mxu0 %v5604_v59  ;;  %v5726_v59 = vld [vmem:[#allocation7 + $0x304] ss:$16 sps:$4 sm:$0xff]  }
 0x214   :  { %3793 = vmatprep.subr.bf16.mxu0 %v5609_v62  ;;  %3833 = vmatpush1.bf16.msra.mxu1 %v5700_v6  ;;  %v5631_v62 = vld [vmem:[#allocation7 + $0xe8] ss:$16 sps:$4 sm:$0xff]   ;;  %v5645_v6 = vld [vmem:[#allocation7 + $0x6c] ss:$16 sps:$4 sm:$0xff]  }
 0x215   :  { %3834 = vmatprep.subr.bf16.mxu1 %v5705_v17  ;;  %v5648_v17 = vld [vmem:[#allocation7 + $0x4c] ss:$16 sps:$4 sm:$0xff]  }
 0x217   :  { %3794 = vmatpush2.bf16.msra.mxu0 %v5607_v0  ;;  %v5636_v0 = vld [vmem:[#allocation7 + $0xcc] ss:$16 sps:$4 sm:$0xff]  }
 0x218   :  { %3795 = vmatprep.subr.bf16.mxu0 %v5612_v2  ;;  %3835 = vmatpush2.bf16.msra.mxu1 %v5703_v21  ;;  %v5634_v2 = vld [vmem:[#allocation7 + $0xc8] ss:$16 sps:$4 sm:$0xff]   ;;  %v5651_v21 = vld [vmem:[#allocation7 + $0x2c] ss:$16 sps:$4 sm:$0xff]  }
 0x219   :  { %3836 = vmatprep.subr.bf16.mxu1 %v5708_v23  ;;  %v5654_v23 = vld [vmem:[#allocation7 + $0xc] ss:$16 sps:$4 sm:$0xff]  }
 0x21b   :  { %3796 = vmatpush2.bf16.msra.mxu0 %v5610_v3  ;;  %v5637_v3 = vld [vmem:[#allocation7 + $0xa8] ss:$16 sps:$4 sm:$0xff]  }
 0x21c   :  { %3797 = vmatprep.subr.bf16.mxu0 %v5615_v5  ;;  %3837 = vmatpush2.bf16.msra.mxu1 %v5706_v24  ;;  %v5640_v5 = vld [vmem:[#allocation7 + $0x88] ss:$16 sps:$4 sm:$0xff]   ;;  %v5657_v24 = vld [vmem:[#allocation7 + $0x1ec] ss:$16 sps:$4 sm:$0xff]  }
 0x21d   :  { %3838 = vmatprep.subr.bf16.mxu1 %v5711_v25  ;;  %v5660_v25 = vld [vmem:[#allocation7 + $0x1cc] ss:$16 sps:$4 sm:$0xff]  }
 0x21f   :  { %3798 = vmatpush2.bf16.msra.mxu0 %v5613_v9  ;;  %v5643_v9 = vld [vmem:[#allocation7 + $0x68] ss:$16 sps:$4 sm:$0xff]  }
 0x220   :  { %3799 = vmatprep.subr.bf16.mxu0 %v5618_v20  ;;  %3839 = vmatpush2.bf16.msra.mxu1 %v5709_v27  ;;  %v5646_v20 = vld [vmem:[#allocation7 + $0x48] ss:$16 sps:$4 sm:$0xff]   ;;  %v5663_v27 = vld [vmem:[#allocation7 + $0x1ac] ss:$16 sps:$4 sm:$0xff]  }
 0x221   :  { %3840 = vmatprep.subr.bf16.mxu1 %v5714_v29  ;;  %v5666_v29 = vld [vmem:[#allocation7 + $0x18c] ss:$16 sps:$4 sm:$0xff]  }
 0x223   :  { %3800 = vmatpush2.bf16.msra.mxu0 %v5616_v22  ;;  %v5649_v22 = vld [vmem:[#allocation7 + $0x28] ss:$16 sps:$4 sm:$0xff]  }
 0x224   :  { %3801 = vmatprep.subr.bf16.mxu0 %v5621_v53  ;;  %3841 = vmatpush2.bf16.msra.mxu1 %v5712_v31  ;;  %v5652_v53 = vld [vmem:[#allocation7 + $0x8] ss:$16 sps:$4 sm:$0xff]   ;;  %v5669_v31 = vld [vmem:[#allocation7 + $0x16c] ss:$16 sps:$4 sm:$0xff]  }
 0x225   :  { %3842 = vmatprep.subr.bf16.mxu1 %v5717_v38  ;;  %v5672_v38 = vld [vmem:[#allocation7 + $0x14c] ss:$16 sps:$4 sm:$0xff]  }
 0x227   :  { %3802 = vmatpush2.bf16.msra.mxu0 %v5619_v14  ;;  %v5655_v14 = vld [vmem:[#allocation7 + $0x1e8] ss:$16 sps:$4 sm:$0xff]  }
 0x228   :  { %3803 = vmatprep.subr.bf16.mxu0 %v5624_v26  ;;  %3843 = vmatpush2.bf16.msra.mxu1 %v5715_v40  ;;  %v5658_v26 = vld [vmem:[#allocation7 + $0x1c8] ss:$16 sps:$4 sm:$0xff]  }
 0x229   :  { %3844 = vmatprep.subr.bf16.mxu1 %v5720_v18 }
 0x22b   :  { %3804 = vmatpush2.bf16.msra.mxu0 %v5622_v28  ;;  %v5661_v28 = vld [vmem:[#allocation7 + $0x1a8] ss:$16 sps:$4 sm:$0xff]  }
 0x22c   :  { %3805 = vmatprep.subr.bf16.mxu0 %v5627_v35  ;;  %3845 = vmatpush2.bf16.msra.mxu1 %v5718_v61  ;;  %v5664_v35 = vld [vmem:[#allocation7 + $0x188] ss:$16 sps:$4 sm:$0xff]  }
 0x22d   :  { %3846 = vmatprep.subr.bf16.mxu1 %v5723_v32 }
 0x22f   :  { %3806 = vmatpush2.bf16.msra.mxu0 %v5625_v39  ;;  %v5667_v39 = vld [vmem:[#allocation7 + $0x168] ss:$16 sps:$4 sm:$0xff]  }
 0x230   :  { %3807 = vmatprep.subr.bf16.mxu0 %v5630_v34  ;;  %3847 = vmatpush2.bf16.msra.mxu1 %v5721_v10  ;;  %v5670_v34 = vld [vmem:[#allocation7 + $0x148] ss:$16 sps:$4 sm:$0xff]  }
 0x231   :  { %3848 = vmatprep.subr.bf16.mxu1 %v5726_v59 }
 0x233   :  { %3808 = vmatpush2.bf16.msra.mxu0 %v5628_v19  ;;  %v5673_v19 = vld [vmem:[#allocation7 + $0x128] ss:$16 sps:$4 sm:$0xff]  }
 0x234   :  { %3859 = vmatprep.subr.bf16.mxu0 %v5633_v42  ;;  %3849 = vmatpush2.bf16.msra.mxu1 %v5724_v60  ;;  %v5678_v42 = vld [vmem:[#allocation7 + $0x10c] ss:$16 sps:$4 sm:$0xff]  }
 0x235   :  { %3900 = vmatprep.subr.bf16.mxu1 %v5729_v1 }
 0x236   :  { %v2767_v45 = vpop.f32.mrf.mxu0  ;;  %v2808_v48 = vpop.f32.mrf.mxu1 }
 0x237   :  { %v2768_v47 = vadd.f32 %v2767_v45, %v2727_v44  ;;  %v5676_v44 = vld [vmem:[#allocation7 + $0x108] ss:$16 sps:$4 sm:$0xff]  }
 0x238   :  { %v2769_v49 = vpop.f32.mrf.mxu0  ;;  %v2810_v52 = vpop.f32.mrf.mxu1 }
 0x239   :  { %v2809_v50 = vadd.f32 %v2808_v48, %v2768_v47  ;;  %v2770_v51 = vadd.f32 %v2769_v49, %v2729_v46  ;;  %v1362_v47 = vrot.slane %v6091_v30, %v6024_v13  ;;  %v1366_v48 = vrot.slane %v6091_v30, %v6030_v16  ;;  %v5727_v30 = vld [vmem:[#allocation7 + $0x2e8] ss:$16 sps:$4 sm:$0xff]  }
 0x23a   :  { %v2771_v54 = vpop.f32.mrf.mxu0  ;;  %v2812_v36 = vpop.f32.mrf.mxu1 }
 0x23b   :  { %v2811_v55 = vadd.f32 %v2810_v52, %v2770_v51  ;;  %v2979_v56 = vmax.f32 %v2809_v50, 0.0 }
 0x23c   :  { %v2772_v57 = vpop.f32.mrf.mxu0  ;;  %v2813_v58 = vpop.f32.mrf.mxu1 }
 0x23d   :  { %v2980_v33 = vmax.f32 %v2811_v55, 0.0  ;;  %v6101_v63 = vpack.c.bf16 %v2979_v56, %v2979_v56 }
 0x23f   :  { %v2984_v37 = vpack.c.bf16 %v2980_v33, %v2980_v33 }
 0x241   :  { %3809 = vmatprep.mubr.bf16.mxu0 %v2984_v37 }
 0x242   :  { %3810 = vmatmul.mubr.bf16.vlgmr.msra.gmra.mxu0 %v6101_v63 }
 0x243   :  { %3860 = vmatpush1.bf16.msra.mxu0 %v5631_v62  ;;  %3891 = vmatprep.mubr.bf16.mxu0 %v2984_v37 }
 0x244   :  { %3861 = vmatprep.subr.bf16.mxu0 %v5636_v0 }
 0x247   :  { %3862 = vmatpush1.bf16.msra.mxu0 %v5634_v2  ;;  %v5732_v2 = vld [vmem:[#allocation7 + $0x2cc] ss:$16 sps:$4 sm:$0xff]  }
 0x248   :  { %3863 = vmatprep.subr.bf16.mxu0 %v5639_v12  ;;  %v5730_v12 = vld [vmem:[#allocation7 + $0x2c8] ss:$16 sps:$4 sm:$0xff]  }
 0x24b   :  { %3864 = vmatpush1.bf16.msra.mxu0 %v5637_v3  ;;  %v5735_v3 = vld [vmem:[#allocation7 + $0x2ac] ss:$16 sps:$4 sm:$0xff]  }
 0x24c   :  { %3865 = vmatprep.subr.bf16.mxu0 %v5642_v4  ;;  %v5733_v4 = vld [vmem:[#allocation7 + $0x2a8] ss:$16 sps:$4 sm:$0xff]  }
 0x24f   :  { %3866 = vmatpush1.bf16.msra.mxu0 %v5640_v5  ;;  %v5738_v5 = vld [vmem:[#allocation7 + $0x28c] ss:$16 sps:$4 sm:$0xff]  }
 0x250   :  { %3867 = vmatprep.subr.bf16.mxu0 %v5645_v6  ;;  %v5775_v6 = vld [vmem:[%s6339_s7 + $0x78] sm:$0xff]  }
 0x253   :  { %3868 = vmatpush1.bf16.msra.mxu0 %v5643_v9  ;;  %v5776_v9 = vld [vmem:[%s6339_s7 + $0x38] sm:$0xff]  }
 0x254   :  { %3869 = vmatprep.subr.bf16.mxu0 %v5648_v17  ;;  %v5777_v17 = vld [vmem:[%s6339_s7 + $0x70] sm:$0xff]  }
 0x257   :  { %3870 = vmatpush1.bf16.msra.mxu0 %v5646_v20  ;;  %v5736_v20 = vld [vmem:[#allocation7 + $0x288] ss:$16 sps:$4 sm:$0xff]  }
 0x258   :  { %3871 = vmatprep.subr.bf16.mxu0 %v5651_v21  ;;  %v5778_v21 = vld [vmem:[%s6339_s7 + $0x30] sm:$0xff]  }
 0x25b   :  { %3872 = vmatpush1.bf16.msra.mxu0 %v5649_v22  ;;  %v5741_v22 = vld [vmem:[#allocation7 + $0x26c] ss:$16 sps:$4 sm:$0xff]  }
 0x25c   :  { %3873 = vmatprep.subr.bf16.mxu0 %v5654_v23  ;;  %v5779_v23 = vld [vmem:[%s6339_s7 + $0x68] sm:$0xff]  }
 0x25f   :  { %3874 = vmatpush1.bf16.msra.mxu0 %v5652_v53  ;;  %v5739_v53 = vld [vmem:[#allocation7 + $0x268] ss:$16 sps:$4 sm:$0xff]  }
 0x260   :  { %3875 = vmatprep.subr.bf16.mxu0 %v5657_v24  ;;  %v5780_v24 = vld [vmem:[%s6339_s7 + $0x28] sm:$0xff]  }
 0x263   :  { %3876 = vmatpush2.bf16.msra.mxu0 %v5655_v14  ;;  %v5744_v14 = vld [vmem:[#allocation7 + $0x24c] ss:$16 sps:$4 sm:$0xff]  }
 0x264   :  { %3877 = vmatprep.subr.bf16.mxu0 %v5660_v25  ;;  %v5781_v25 = vld [vmem:[%s6339_s7 + $0x60] sm:$0xff]  }
 0x267   :  { %3878 = vmatpush2.bf16.msra.mxu0 %v5658_v26  ;;  %v5742_v26 = vld [vmem:[#allocation7 + $0x248] ss:$16 sps:$4 sm:$0xff]  }
 0x268   :  { %3879 = vmatprep.subr.bf16.mxu0 %v5663_v27  ;;  %v5782_v27 = vld [vmem:[%s6339_s7 + $0x20] sm:$0xff]  }
 0x26b   :  { %3880 = vmatpush2.bf16.msra.mxu0 %v5661_v28  ;;  %v5747_v28 = vld [vmem:[#allocation7 + $0x22c] ss:$16 sps:$4 sm:$0xff]  }
 0x26c   :  { %3881 = vmatprep.subr.bf16.mxu0 %v5666_v29  ;;  %v5783_v29 = vld [vmem:[%s6339_s7 + $0x58] sm:$0xff]  }
 0x26f   :  { %3882 = vmatpush2.bf16.msra.mxu0 %v5664_v35  ;;  %v5745_v35 = vld [vmem:[#allocation7 + $0x228] ss:$16 sps:$4 sm:$0xff]  }
 0x270   :  { %3883 = vmatprep.subr.bf16.mxu0 %v5669_v31  ;;  %v5784_v31 = vld [vmem:[%s6339_s7 + $0x18] sm:$0xff]  }
 0x273   :  { %3884 = vmatpush2.bf16.msra.mxu0 %v5667_v39  ;;  %v5750_v39 = vld [vmem:[#allocation7 + $0x20c] ss:$16 sps:$4 sm:$0xff]  }
 0x274   :  { %3885 = vmatprep.subr.bf16.mxu0 %v5672_v38  ;;  %v5785_v38 = vld [vmem:[%s6339_s7 + $0x50] sm:$0xff]  }
 0x276   :  { %v2849_v40 = vpop.f32.mrf.mxu0  ;;  %v2890_v41 = vpop.f32.mrf.mxu1 }
 0x277   :  { %3886 = vmatpush2.bf16.msra.mxu0 %v5670_v34  ;;  %v2850_v49 = vadd.f32 %v2849_v40, %v1362_v47  ;;  %v5748_v34 = vld [vmem:[#allocation7 + $0x208] ss:$16 sps:$4 sm:$0xff]   ;;  %v5753_v40 = vld [vmem:[#allocation7 + $0x3ec] ss:$16 sps:$4 sm:$0xff]  }
 0x278   :  { %v2851_v18 = vpop.f32.mrf.mxu0  ;;  %3887 = vmatprep.subr.bf16.mxu0 %v5675_v8  ;;  %v2892_v7 = vpop.f32.mrf.mxu1  ;;  %v5786_v8 = vld [vmem:[%s6339_s7 + $0x10] sm:$0xff]   ;;  %v5766_v47 = vld [vmem:[#allocation7 + $0x348] ss:$16 sps:$4 sm:$0xff]  }
 0x279   :  { %v2852_v50 = vadd.f32 %v2851_v18, %v1366_v48  ;;  %v2891_v51 = vadd.f32 %v2890_v41, %v2850_v49  ;;  %v5751_v41 = vld [vmem:[#allocation7 + $0x3e8] ss:$16 sps:$4 sm:$0xff]   ;;  %v5771_v48 = vld [vmem:[#allocation7 + $0x32c] ss:$16 sps:$4 sm:$0xff]  }
 0x27a   :  { %v2853_v61 = vpop.f32.mrf.mxu0  ;;  %v2894_v43 = vpop.f32.mrf.mxu1  ;;  %v5754_v18 = vld [vmem:[#allocation7 + $0x3c8] ss:$16 sps:$4 sm:$0xff]  }
 0x27b   :  { %3888 = vmatpush2.bf16.msra.mxu0 %v5673_v19  ;;  %v2893_v32 = vadd.f32 %v2892_v7, %v2852_v50  ;;  %v5756_v19 = vld [vmem:[#allocation7 + $0x3cc] ss:$16 sps:$4 sm:$0xff]   ;;  %v5757_v7 = vld [vmem:[#allocation7 + $0x3a8] ss:$16 sps:$4 sm:$0xff]  }
 0x27c   :  { %v2854_v45 = vpop.f32.mrf.mxu0  ;;  %3889 = vmatprep.subr.bf16.mxu0 %v5678_v42  ;;  %v2895_v46 = vpop.f32.mrf.mxu1  ;;  %v5759_v42 = vld [vmem:[#allocation7 + $0x3ac] ss:$16 sps:$4 sm:$0xff]   ;;  %v5760_v43 = vld [vmem:[#allocation7 + $0x388] ss:$16 sps:$4 sm:$0xff]  }
 0x27d   :  { %v5762_v61 = vld [vmem:[#allocation7 + $0x38c] ss:$16 sps:$4 sm:$0xff]   ;;  %v5763_v45 = vld [vmem:[#allocation7 + $0x368] ss:$16 sps:$4 sm:$0xff]  }
 0x27e   :  { %v5768_v46 = vld [vmem:[#allocation7 + $0x34c] ss:$16 sps:$4 sm:$0xff]   ;;  %v5769_v49 = vld [vmem:[#allocation7 + $0x328] ss:$16 sps:$4 sm:$0xff]  }
 0x27f   :  { %3890 = vmatpush2.bf16.msra.mxu0 %v5676_v44  ;;  %v5765_v44 = vld [vmem:[#allocation7 + $0x36c] ss:$16 sps:$4 sm:$0xff]  }
 0x280   :  { %5064 = vmatprep.subr.bf16.mxu0 %v5775_v6  ;;  %v5774_v50 = vld [vmem:[#allocation7 + $0x30c] ss:$16 sps:$4 sm:$0xff]  }
 0x282   :  { %3892 = vmatmul.mubr.bf16.vlgmr.msra.gmra.mxu0 %v6101_v63 }
 0x283   :  { %5065 = vmatpush3.bf16.msra.mxu0 %v5776_v9 }
 0x284   :  { %5066 = vmatprep.subr.bf16.mxu0 %v5777_v17  ;;  %v5803_v17 = vld [vmem:[%s6339_s7 + $0xc8] sm:$0xff]  }
 0x287   :  { %5067 = vmatpush3.bf16.msra.mxu0 %v5778_v21  ;;  %v5804_v21 = vld [vmem:[%s6339_s7 + $0x88] sm:$0xff]  }
 0x288   :  { %5068 = vmatprep.subr.bf16.mxu0 %v5779_v23 }
 0x28b   :  { %5069 = vmatpush3.bf16.msra.mxu0 %v5780_v24 }
 0x28c   :  { %5070 = vmatprep.subr.bf16.mxu0 %v5781_v25 }
 0x28f   :  { %5071 = vmatpush3.bf16.msra.mxu0 %v5782_v27 }
 0x290   :  { %5072 = vmatprep.subr.bf16.mxu0 %v5783_v29 }
 0x293   :  { %5073 = vmatpush3.bf16.msra.mxu0 %v5784_v31 }
 0x294   :  { %5074 = vmatprep.subr.bf16.mxu0 %v5785_v38 }
 0x297   :  { %5075 = vmatpush3.bf16.msra.mxu0 %v5786_v8 }
 0x2b6   :  { %v2931_v52 = vpop.f32.mrf.mxu0 }
 0x2b7   :  { %v2932_v54 = vadd.f32 %v2931_v52, %v2891_v51  ;;  %v2972_v10 = vpop.f32.mrf.mxu1  ;;  %v5772_v51 = vld [vmem:[#allocation7 + $0x308] ss:$16 sps:$4 sm:$0xff]  }
 0x2b8   :  { %v2933_v55 = vpop.f32.mrf.mxu0 }
 0x2b9   :  { %v2973_v36 = vadd.f32 %v2972_v10, %v2932_v54  ;;  %v2934_v56 = vadd.f32 %v2933_v55, %v2893_v32  ;;  %v2974_v57 = vpop.f32.mrf.mxu1  ;;  %v5787_v54 = vld [vmem:[%s6339_s7 + $0x48] sm:$0xff]  }
 0x2ba   :  { %v2935_v33 = vpop.f32.mrf.mxu0  ;;  %v5788_v10 = vld [vmem:[%s6339_s7 + $0x8] sm:$0xff]   ;;  %5076 = vmatprep.subr.bf16.mxu0 %v5787_v54  ;;  %v4300_v54 = vld [vmem:[%s6341_s9 + $0x38] sm:$0xff] }
 0x2bb   :  { %v2975_v58 = vadd.f32 %v2974_v57, %v2934_v56  ;;  %v2976_v59 = vpop.f32.mrf.mxu1  ;;  %v2981_v60 = vmax.f32 %v2973_v36, 0.0  ;;  %5077 = vmatpush3.bf16.msra.mxu0 %v5788_v10  ;;  %v5789_v56 = vld [vmem:[%s6339_s7 + $0x40] sm:$0xff]   ;;  %v5791_v33 = vld [vmem:[%s6339_s7 + $0xf8] sm:$0xff]   ;;  %v4299_v10 = vld [vmem:[%s6341_s9 + $0x30] sm:$0xff] }
 0x2bc   :  { %v2936_v37 = vpop.f32.mrf.mxu0  ;;  %v5790_v57 = vld [vmem:[%s6339_s7] sm:$0xff]   ;;  %5078 = vmatprep.subr.bf16.mxu0 %v5789_v56  ;;  %v5793_v59 = vld [vmem:[%s6339_s7 + $0xf0] sm:$0xff]   ;;  %v4296_v56 = vld [vmem:[%s6341_s9 + $0x18] sm:$0xff] }
 0x2bd   :  { %v2982_v62 = vmax.f32 %v2975_v58, 0.0  ;;  %v2977_v63 = vpop.f32.mrf.mxu1  ;;  %v6109_v1 = vpack.c.bf16 %v2981_v60, %v2981_v60  ;;  %v5792_v58 = vld [vmem:[%s6339_s7 + $0xb8] sm:$0xff]   ;;  %v5794_v60 = vld [vmem:[%s6339_s7 + $0xb0] sm:$0xff]   ;;  %v5795_v37 = vld [vmem:[%s6339_s7 + $0xe8] sm:$0xff]  }
 0x2be   :  { %v5797_v63 = vld [vmem:[%s6339_s7 + $0xe0] sm:$0xff]  }
 0x2bf   :  { %v2986_v0 = vpack.c.bf16 %v2982_v62, %v2982_v62  ;;  %5079 = vmatpush3.bf16.msra.mxu0 %v5790_v57  ;;  %v5796_v62 = vld [vmem:[%s6339_s7 + $0xa8] sm:$0xff]   ;;  %v4295_v57 = vld [vmem:[%s6341_s9 + $0x10] sm:$0xff] }
 0x2c1   :  { %3850 = vmatprep.mubr.bf16.mxu1 %v2986_v0 }
 0x2c2   :  { %3851 = vmatmul.mubr.bf16.vlgmr.msra.gmra.mxu1 %v6109_v1 }
 0x2c3   :  { %3901 = vmatpush1.bf16.msra.mxu1 %v5727_v30  ;;  %3932 = vmatprep.mubr.bf16.mxu1 %v2986_v0  ;;  %v5798_v0 = vld [vmem:[%s6339_s7 + $0xa0] sm:$0xff]   ;;  %v5799_v30 = vld [vmem:[%s6339_s7 + $0xd8] sm:$0xff]  }
 0x2c4   :  { %3902 = vmatprep.subr.bf16.mxu1 %v5732_v2  ;;  %v5801_v2 = vld [vmem:[%s6339_s7 + $0xd0] sm:$0xff]  }
 0x2c7   :  { %3903 = vmatpush1.bf16.msra.mxu1 %v5730_v12  ;;  %v5802_v12 = vld [vmem:[%s6339_s7 + $0x90] sm:$0xff]  }
 0x2c8   :  { %3904 = vmatprep.subr.bf16.mxu1 %v5735_v3  ;;  %v3115_v3 = vld [vmem:[%s6338_s6] sm:$0xf] }
 0x2c9   :  { %v3120_v24 = vrot.slane %v3115_v3, %v6016_v11 }
 0x2cb   :  { %3905 = vmatpush1.bf16.msra.mxu1 %v5733_v4  ;;  %v3128_v4 = vrot.slane %v3115_v3, %v6024_v13  ;;  %v5805_v13 = vld [vmem:[%s6339_s7 + $0xc0] sm:$0xff]  }
 0x2cc   :  { %3906 = vmatprep.subr.bf16.mxu1 %v5738_v5  ;;  %v3132_v5 = vrot.slane %v3115_v3, %v6030_v16 }
 0x2cf   :  { %3907 = vmatpush1.bf16.msra.mxu1 %v5736_v20 }
 0x2d0   :  { %3908 = vmatprep.subr.bf16.mxu1 %v5741_v22 }
 0x2d3   :  { %3909 = vmatpush1.bf16.msra.mxu1 %v5739_v53  ;;  %v5806_v53 = vld [vmem:[%s6339_s7 + $0x80] sm:$0xff]  }
 0x2d4   :  { %3910 = vmatprep.subr.bf16.mxu1 %v5744_v14  ;;  %v3124_v14 = vrot.slane %v3115_v3, %v6027_v15  ;;  %v5028_v3 = vld [vmem:[%s6340_s8] ss:$0 sm:$0xff] }
 0x2d7   :  { %3911 = vmatpush1.bf16.msra.mxu1 %v5742_v26 }
 0x2d8   :  { %3912 = vmatprep.subr.bf16.mxu1 %v5747_v28 }
 0x2db   :  { %3913 = vmatpush1.bf16.msra.mxu1 %v5745_v35 }
 0x2dc   :  { %3914 = vmatprep.subr.bf16.mxu1 %v5750_v39 }
 0x2df   :  { %3915 = vmatpush1.bf16.msra.mxu1 %v5748_v34 }
 0x2e0   :  { %3916 = vmatprep.subr.bf16.mxu1 %v5753_v40 }
 0x2e3   :  { %3917 = vmatpush2.bf16.msra.mxu1 %v5751_v41 }
 0x2e4   :  { %3918 = vmatprep.subr.bf16.mxu1 %v5756_v19 }
 0x2e7   :  { %3919 = vmatpush2.bf16.msra.mxu1 %v5754_v18 }
 0x2e8   :  { %3920 = vmatprep.subr.bf16.mxu1 %v5759_v42 }
 0x2eb   :  { %3921 = vmatpush2.bf16.msra.mxu1 %v5757_v7 }
 0x2ec   :  { %3922 = vmatprep.subr.bf16.mxu1 %v5762_v61 }
 0x2ef   :  { %3923 = vmatpush2.bf16.msra.mxu1 %v5760_v43 }
 0x2f0   :  { %3924 = vmatprep.subr.bf16.mxu1 %v5765_v44 }
 0x2f3   :  { %3925 = vmatpush2.bf16.msra.mxu1 %v5763_v45  ;;  %v4308_v45 = vld [vmem:[%s6341_s9 + $0x78] sm:$0xff] }
 0x2f4   :  { %3926 = vmatprep.subr.bf16.mxu1 %v5768_v46  ;;  %v5904_v46 = vmov 0.0  }
 0x2f5   :  { %5134 = vmatprep.subr.mxu0 %v5904_v46 }
 0x2f7   :  { %3927 = vmatpush2.bf16.msra.mxu1 %v5766_v47  ;;  %v4307_v47 = vld [vmem:[%s6341_s9 + $0x70] sm:$0xff] }
 0x2f8   :  { %3928 = vmatprep.subr.bf16.mxu1 %v5771_v48  ;;  %v4306_v48 = vld [vmem:[%s6341_s9 + $0x68] sm:$0xff] }
 0x2fb   :  { %3929 = vmatpush2.bf16.msra.mxu1 %v5769_v49  ;;  %v4305_v49 = vld [vmem:[%s6341_s9 + $0x60] sm:$0xff] }
 0x2fc   :  { %3930 = vmatprep.subr.bf16.mxu1 %v5774_v50  ;;  %v4304_v50 = vld [vmem:[%s6341_s9 + $0x58] sm:$0xff] }
 0x2ff   :  { %3931 = vmatpush2.bf16.msra.mxu1 %v5772_v51  ;;  %v4303_v51 = vld [vmem:[%s6341_s9 + $0x50] sm:$0xff] }
 0x300   :  { %5086 = vmatprep.subr.bf16.mxu1 %v5791_v33  ;;  %v4294_v33 = vld [vmem:[%s6341_s9 + $0x8] sm:$0xff] }
 0x302   :  { %3933 = vmatmul.mubr.bf16.vlgmr.msra.gmra.mxu1 %v6109_v1  ;;  %v3811_v52 = vpop.f32.mrf.mxu0  ;;  %v5800_v1 = vld [vmem:[%s6339_s7 + $0x98] sm:$0xff]  }
 0x303   :  { %5087 = vmatpush3.bf16.msra.mxu1 %v5792_v58  ;;  %v3812_v25 = vadd.f32 %v3811_v52, %v3120_v24  ;;  %v4302_v52 = vld [vmem:[%s6341_s9 + $0x48] sm:$0xff]  ;;  %v4293_v58 = vld [vmem:[%s6341_s9] sm:$0xff] }
 0x304   :  { %v3813_v32 = vpop.f32.mrf.mxu0  ;;  %5088 = vmatprep.subr.bf16.mxu1 %v5793_v59  ;;  %v4394_v59 = vld [vmem:[%s6343_s11 + $0x38] sm:$0xff] }
 0x305   :  { %v3814_v27 = vadd.f32 %v3813_v32, %v3124_v14  ;;  %v4301_v32 = vld [vmem:[%s6341_s9 + $0x40] sm:$0xff] }
 0x306   :  { %v3815_v55 = vpop.f32.mrf.mxu0 }
 0x307   :  { %5089 = vmatpush3.bf16.msra.mxu1 %v5794_v60  ;;  %v4298_v55 = vld [vmem:[%s6341_s9 + $0x28] sm:$0xff]  ;;  %v4393_v60 = vld [vmem:[%s6343_s11 + $0x30] sm:$0xff] }
 0x308   :  { %v3816_v36 = vpop.f32.mrf.mxu0  ;;  %5090 = vmatprep.subr.bf16.mxu1 %v5795_v37  ;;  %v4392_v37 = vld [vmem:[%s6343_s11 + $0x28] sm:$0xff] }
 0x309   :  { %v4297_v36 = vld [vmem:[%s6341_s9 + $0x20] sm:$0xff] }
 0x30b   :  { %5091 = vmatpush3.bf16.msra.mxu1 %v5796_v62  ;;  %v4391_v62 = vld [vmem:[%s6343_s11 + $0x20] sm:$0xff] }
 0x30c   :  { %5092 = vmatprep.subr.bf16.mxu1 %v5797_v63  ;;  %v4390_v63 = vld [vmem:[%s6343_s11 + $0x18] sm:$0xff] }
 0x30f   :  { %5093 = vmatpush3.bf16.msra.mxu1 %v5798_v0 }
 0x310   :  { %5094 = vmatprep.subr.bf16.mxu1 %v5799_v30 }
 0x313   :  { %5095 = vmatpush3.bf16.msra.mxu1 %v5800_v1 }
 0x314   :  { %5096 = vmatprep.subr.bf16.mxu1 %v5801_v2 }
 0x317   :  { %5097 = vmatpush3.bf16.msra.mxu1 %v5802_v12 }
 0x318   :  { %5098 = vmatprep.subr.bf16.mxu1 %v5803_v17 }
 0x31b   :  { %5099 = vmatpush3.bf16.msra.mxu1 %v5804_v21 }
 0x31c   :  { %5100 = vmatprep.subr.bf16.mxu1 %v5805_v13  ;;  %v4388_v13 = vld [vmem:[%s6343_s11 + $0x8] sm:$0xff] }
 0x31f   :  { %5101 = vmatpush3.bf16.msra.mxu1 %v5806_v53  ;;  %v5061_v53 = vld [vmem:[%s6342_s10] ss:$0 sm:$0xff] }
 0x320   :  { %5169 = vmatprep.subr.mxu1 %v5904_v46 }
 0x342   :  { %v3893_v6 = vpop.f32.mrf.mxu0 }
 0x343   :  { %v3894_v9 = vadd.f32 %v3893_v6, %v3128_v4 }
 0x344   :  { %v3895_v20 = vpop.f32.mrf.mxu0 }
 0x345   :  { %v3896_v22 = vadd.f32 %v3895_v20, %v3132_v5 }
 0x346   :  { %v3897_v23 = vpop.f32.mrf.mxu0 }
 0x347   :  { %v4389_v23 = vld [vmem:[%s6343_s11 + $0x10] sm:$0xff] }
 0x348   :  { %v3898_v16 = vpop.f32.mrf.mxu0 }
 0x349   :  { %v4387_v16 = vld [vmem:[%s6343_s11] sm:$0xff]  ;;  %s5906_s11 = smov 124  }
 0x382   :  { %v3852_v26 = vpop.f32.mrf.mxu1 }
 0x383   :  { %v3853_v28 = vadd.f32 %v3852_v26, %v3812_v25 }
 0x384   :  { %v3854_v29 = vpop.f32.mrf.mxu1 }
 0x385   :  { %v3855_v35 = vadd.f32 %v3854_v29, %v3814_v27  ;;  %v3941_v31 = vmax.f32 %v3853_v28, 0.0  ;;  %v5062_v27 = vld [vmem:[%s6344_s12] ss:$0 sm:$0xff]  ;;  %s5907_s12 = smov [#allocation8]  }
 0x386   :  { %v3856_v39 = vpop.f32.mrf.mxu1  ;;  %s4501_s19 = sshll.u32 %s5907_s12, 4  ;;  %s4502_s19 = int_to_ptr.vmem [resolvable:$true] %s4501_s19 }
 0x387   :  { %v3942_v38 = vmax.f32 %v3855_v35, 0.0  ;;  %v3945_v40 = vpack.c.bf16 %v3941_v31, %v3941_v31  ;;  %s5871_s20 = scalar_lea.vmem %s4502_s19, 32  ;;  %p5876_p2 = scmp.lt.s32.totalorder %s4502_s19, %s4502_s19 }
 0x388   :  { %v3857_v34 = vpop.f32.mrf.mxu1  ;;  %p5872_p1 = scmp.ne.s32.totalorder %s4502_s19, %s5871_s20  ;;  %p5877_p3 = scmp.lt.s32.totalorder %s5871_s20, %s5871_s20 }
 0x389   :  { %v3946_v8 = vpack.c.bf16 %v3942_v38, %v3942_v38 }
 0x38a   :  { %p5878_p4 = por %p5877_p3, %p5876_p2 }
 0x38b   :  { %4244 = vmatprep.mubr.bf16.mxu0 %v3946_v8 }
 0x38c   :  { %4245 = vmatmul.mubr.bf16.vlgmr.msra.gmra.mxu0 %v3945_v40  ;;  %p5879_p5 = pnand %p5878_p4, %p5872_p1 }
 0x38d   :  { %5135 = vmatpush3.msra.mxu0 %v4308_v45  ;;  %5166 = vmatprep.mubr.msk.f32.mxu0 %vm5905_vm0, %v5904_v46 }
 0x38e   :  { %5136 = vmatprep.subr.mxu0 %v5904_v46 }
 0x38f   :  { %5137 = vmatpush3.msra.mxu0 %v4307_v47 }
 0x390   :  { %5138 = vmatprep.subr.mxu0 %v5904_v46 }
 0x391   :  { %5139 = vmatpush3.msra.mxu0 %v4306_v48 }
 0x392   :  { %5140 = vmatprep.subr.mxu0 %v5904_v46 }
 0x393   :  { %5141 = vmatpush3.msra.mxu0 %v4305_v49 }
 0x394   :  { %5142 = vmatprep.subr.mxu0 %v5904_v46 }
 0x395   :  { %5143 = vmatpush3.msra.mxu0 %v4304_v50 }
 0x396   :  { %5144 = vmatprep.subr.mxu0 %v5904_v46 }
 0x397   :  { %5145 = vmatpush3.msra.mxu0 %v4303_v51 }
 0x398   :  { %5146 = vmatprep.subr.mxu0 %v5904_v46 }
 0x399   :  { %5147 = vmatpush3.msra.mxu0 %v4302_v52 }
 0x39a   :  { %5148 = vmatprep.subr.mxu0 %v5904_v46 }
 0x39b   :  { %5149 = vmatpush3.msra.mxu0 %v4301_v32 }
 0x39c   :  { %5150 = vmatprep.subr.mxu0 %v5904_v46 }
 0x39d   :  { %5151 = vmatpush3.msra.mxu0 %v4300_v54 }
 0x39e   :  { %5152 = vmatprep.subr.mxu0 %v5904_v46 }
 0x39f   :  { %5153 = vmatpush3.msra.mxu0 %v4299_v10 }
 0x3a0   :  { %5154 = vmatprep.subr.mxu0 %v5904_v46 }
 0x3a1   :  { %5155 = vmatpush3.msra.mxu0 %v4298_v55 }
 0x3a2   :  { %5156 = vmatprep.subr.mxu0 %v5904_v46 }
 0x3a3   :  { %5157 = vmatpush3.msra.mxu0 %v4297_v36 }
 0x3a4   :  { %5158 = vmatprep.subr.mxu0 %v5904_v46 }
 0x3a5   :  { %5159 = vmatpush3.msra.mxu0 %v4296_v56 }
 0x3a6   :  { %5160 = vmatprep.subr.mxu0 %v5904_v46 }
 0x3a7   :  { %5161 = vmatpush3.msra.mxu0 %v4295_v57 }
 0x3a8   :  { %5162 = vmatprep.subr.mxu0 %v5904_v46 }
 0x3a9   :  { %5163 = vmatpush3.msra.mxu0 %v4294_v33 }
 0x3aa   :  { %5164 = vmatprep.subr.mxu0 %v5904_v46 }
 0x3ab   :  { %5165 = vmatpush3.msra.mxu0 %v4293_v58 }
 0x3c2   :  { %v3934_v41 = vpop.f32.mrf.mxu1 }
 0x3c3   :  { %v3935_v19 = vadd.f32 %v3934_v41, %v3894_v9 }
 0x3c4   :  { %v3936_v18 = vpop.f32.mrf.mxu1 }
 0x3c5   :  { %v3937_v11 = vadd.f32 %v3936_v18, %v3896_v22  ;;  %v3943_v42 = vmax.f32 %v3935_v19, 0.0 }
 0x3c6   :  { %v3938_v15 = vpop.f32.mrf.mxu1 }
 0x3c7   :  { %v3944_v7 = vmax.f32 %v3937_v11, 0.0  ;;  %v3947_v44 = vpack.c.bf16 %v3943_v42, %v3943_v42 }
 0x3c8   :  { %v3939_v61 = vpop.f32.mrf.mxu1 }
 0x3c9   :  { %v3948_v43 = vpack.c.bf16 %v3944_v7, %v3944_v7 }
 0x3cb   :  { %4284 = vmatprep.mubr.bf16.mxu1 %v3948_v43 }
 0x3cc   :  { %4285 = vmatmul.mubr.bf16.vlgmr.msra.gmra.mxu1 %v3947_v44 }
 0x3cd   :  { %5185 = vmatprep.mubr.msk.f32.mxu1 %vm5905_vm0, %v5904_v46  ;;  %5170 = vmatpush3.msra.mxu1 %v4394_v59 }
 0x3ce   :  { %5171 = vmatprep.subr.mxu1 %v5904_v46 }
 0x3cf   :  { %5172 = vmatpush3.msra.mxu1 %v4393_v60 }
 0x3d0   :  { %5173 = vmatprep.subr.mxu1 %v5904_v46 }
 0x3d1   :  { %5174 = vmatpush3.msra.mxu1 %v4392_v37 }
 0x3d2   :  { %5175 = vmatprep.subr.mxu1 %v5904_v46 }
 0x3d3   :  { %5176 = vmatpush3.msra.mxu1 %v4391_v62 }
 0x3d4   :  { %5177 = vmatprep.subr.mxu1 %v5904_v46 }
 0x3d5   :  { %5178 = vmatpush3.msra.mxu1 %v4390_v63 }
 0x3d6   :  { %5179 = vmatprep.subr.mxu1 %v5904_v46 }
 0x3d7   :  { %5180 = vmatpush3.msra.mxu1 %v4389_v23 }
 0x3d8   :  { %5181 = vmatprep.subr.mxu1 %v5904_v46 }
 0x3d9   :  { %5182 = vmatpush3.msra.mxu1 %v4388_v13 }
 0x3da   :  { %5183 = vmatprep.subr.mxu1 %v5904_v46 }
 0x3db   :  { %5184 = vmatpush3.msra.mxu1 %v4387_v16 }
 0x44c   :  { %v5080_v0 = vpop.f32.mrf.mxu0 }
 0x44e   :  { %v5081_v30 = vpop.f32.mrf.mxu0 }
 0x44f   :  { %v5082_v12 = vadd.f32 %v5081_v30, %v5080_v0 }
 0x450   :  { %v5083_v1 = vpop.f32.mrf.mxu0 }
 0x451   :  { %v4247_v6 = vadd.f32 %v5082_v12, %v5028_v3 }
 0x452   :  { %v5084_v2 = vpop.f32.mrf.mxu0 }
 0x48c   :  { %v5102_v4 = vpop.f32.mrf.mxu1 }
 0x48e   :  { %v5103_v5 = vpop.f32.mrf.mxu1 }
 0x48f   :  { %v5104_v9 = vadd.f32 %v5103_v5, %v5102_v4 }
 0x490   :  { %v5105_v17 = vpop.f32.mrf.mxu1 }
 0x491   :  { %v4287_v20 = vadd.f32 %v5104_v9, %v4247_v6 }
 0x492   :  { %v5106_v21 = vpop.f32.mrf.mxu1 }
 0x493   :  { %v4292_v22 = vmax.f32 %v4287_v20, 0.0 }
 0x495   :  { %5167 = vmatmul.mubr.f32.vlgmr.msra.gmra.mxu0 %v4292_v22 }
 0x555   :  { %v4382_v24 = vpop.f32.mrf.mxu0 }
 0x556   :  { %v4383_v14 = vadd.f32 %v5061_v53, %v4382_v24 }
 0x557   :  { %v5168_v25 = vpop.f32.mrf.mxu0 }
 0x558   :  { %v4386_v26 = vmax.f32 %v4383_v14, 0.0 }
 0x55a   :  { %5186 = vmatmul.mubr.msk.f32.vlgmr.msra.gmra.mxu1 %vm4402_vm1, %v4386_v26 }
 0x61a   :  { %v4472_v28 = vpop.f32.mrf.mxu1 }
 0x61b   :  { %v4473_v29 = vadd.f32 %v5062_v27, %v4472_v28 }
 0x61c   :  { %v5187_v35 = vpop.f32.mrf.mxu1 }
 0x61d   :  { %4477 = vrot.lane.b32.xlu1 %v4473_v29, %s5906_s11  ;;  %v4483_v31 = vsel %vm4482_vm2, %v4473_v29, -inf }
 0x61e   :  { %4484 = vmax.xlane.f32.xlu0 %v4483_v31 }
 0x68f   :  { %v4478_v39 = vpop.permute.xlu1 %4477 }
 0x690   :  { %4481 = vst.msk [vmem:[%s6346_s14] sm:$0x3] %vm4480_vm3, %v4478_v39 }
 0x6a7   :  { %v4485_v38 = vpop.xlane.xlu0 %4484 }
 0x6a8   :  { %v4486_v34 = vsub.f32 %v4473_v29, %v4485_v38 }
 0x6aa   :  { %v4487_v8 = vmul.f32 1.442695, %v4486_v34 }
 0x6ac   :  { %5807 = vpow2.f32 %v4487_v8 }
 0x6b9   :  { %v5808_v40 = vpop.eup %5807 }
 0x6ba   :  { %v4489_v41 = vsel %vm4482_vm2, %v5808_v40, 0.0 }
 0x6bb   :  { %4490 = vadd.xlane.f32.xlu0 %v4489_v41 }
 0x744   :  { %v4491_v19 = vpop.xlane.xlu0 %4490 }
 0x745   :  { %5809 = vrcp.f32 %v4491_v19 }
 0x752   :  { %v5810_v18 = vpop.eup %5809 }
 0x753   :  { %v4493_v11 = vmul.f32 %v5810_v18, %v5808_v40 }
 0x755   :  { %4494 = vst.msk [vmem:[#allocation8] sm:$0x3] %vm4482_vm2, %v4493_v11 }
 0x756   :  { %5882 = shalt.err (!%p5879_p5)
}
 0x757   :  { %4504 = dma.vmem_to_hbm [thread:$0]  %s4502_s19, 32, %s6345_s13, [#allocation4]  }
 0x758   :  { %5895 = dma.done.wait [#allocation4], 32  }
 0x759   :  { %5896 = vsyncadd [#allocation4], 4294967264 }
 0x75a   :  { %4512 = vsyncpa [#allocation3], 1 }
 0x75b   :  { %4513 = vsyncpa [#allocation6], 1 }
 0x75c   :  { %4514 = vsyncpa [#allocation4], 1 }

</bundles_post_ra>
